<compile_context>
chip_gen: v7x
topology: tpu7x:2x2x1
jax: 0.10.0
libtpu: 0.0.40
codegen_flags: <defaults>
</compile_context>

<pallas_src>
import functools
import math

import jax
import jax.numpy as jnp
from jax.experimental import pallas as pl
from jax.experimental.pallas import tpu as pltpu


# ----------------------------------------------------------------------------
# In-kernel helpers (plain traced math, not kernels)
# ----------------------------------------------------------------------------

def _ln(x, g, b):
    """Layernorm over the last dim in f32 (residual already added by caller)."""
    mean = jnp.mean(x, axis=-1, keepdims=True)
    xc = x - mean
    var = jnp.mean(xc * xc, axis=-1, keepdims=True)
    return xc * jax.lax.rsqrt(var + 1e-5) * g + b


def _bdot(a, b):
    """bf16-input matmul with f32 accumulation (MXU-friendly on v5e/v6e/v7x)."""
    return jnp.dot(a.astype(jnp.bfloat16), b.astype(jnp.bfloat16),
                   preferred_element_type=jnp.float32)


# ----------------------------------------------------------------------------
# Fused backbone kernel: encoder + all transformer layers, grid=(B, nlayers)
# ----------------------------------------------------------------------------

def _backbone_kernel(x_ref, y_ref, wx_ref, bx_ref, wy_ref, by_ref,
                     wqkv_ref, wo_ref, wm1_ref, wm2_ref, vec_ref, bm1_ref,
                     out_ref, x_sc, *, nhead, eval_pos, nlayers):
    """One (batch, layer) grid step; token slab stays in VMEM across layers."""
    l = pl.program_id(1)
    T = eval_pos

    # --- encoder, executed once per batch element (layer 0) -----------------
    @pl.when(l == 0)
    def _():
        x_in = x_ref[0]                                    # [S, F] f32
        y_in = y_ref[0]                                    # [S, 1] f32, zero past T
        tok = _bdot(x_in, wx_ref[...]) + bx_ref[...]       # [S, E]
        y_emb = y_in * wy_ref[...] + by_ref[...]           # [S, E] (VPU outer product)
        S_, E_ = tok.shape
        row = jax.lax.broadcasted_iota(jnp.int32, (S_, E_), 0)
        x_sc[...] = tok + jnp.where(row < T, y_emb, 0.0)

    # --- one transformer layer ----------------------------------------------
    x = x_sc[...]                                          # [S, E] f32
    S, E = x.shape
    Dh = E // nhead
    vec = vec_ref[0]                                       # [9, E] f32

    # Fused QKV projection (1/sqrt(Dh) folded into Q columns at build time).
    qkv = _bdot(x, wqkv_ref[0])                            # [S, 3E] f32
    q = qkv[:, 0 * E:1 * E] + vec[0:1]                     # [S, E]
    k = qkv[:T, 1 * E:2 * E] + vec[1:2]                    # [T, E] (train rows only)
    v = qkv[:T, 2 * E:3 * E] + vec[2:3]                    # [T, E]

    # Per-head in-context attention; head outputs are concatenated so that the
    # output projection is one dense E-contraction matmul against Wo.
    # TODO(synk): switch to lax.fori_loop over heads at realistic tile sizes.
    heads = []
    for h in range(nhead):
        qh = q[:, h * Dh:(h + 1) * Dh]                     # [S, Dh]
        kh = k[:, h * Dh:(h + 1) * Dh]                     # [T, Dh]
        vh = v[:, h * Dh:(h + 1) * Dh]                     # [T, Dh]
        s = jax.lax.dot_general(qh.astype(jnp.bfloat16), kh.astype(jnp.bfloat16),
                                (((1,), (1,)), ((), ())),
                                preferred_element_type=jnp.float32)   # [S, T]
        m = jnp.max(s, axis=-1, keepdims=True)
        p = jnp.exp(s - m)
        denom = jnp.sum(p, axis=-1, keepdims=True)
        heads.append(_bdot(p, vh) * pl.reciprocal(denom, approx=True))  # [S, Dh]
    attn = jnp.concatenate(heads, axis=-1)                 # [S, E]

    a = _bdot(attn, wo_ref[0]) + vec[3:4]                  # single [S,E]@[E,E] matmul
    x1 = _ln(x + a, vec[4:5], vec[5:6])                    # residual + LN1 fused
    m1 = jax.nn.gelu(_bdot(x1, wm1_ref[0]) + bm1_ref[0], approximate=True)
    m2 = _bdot(m1, wm2_ref[0]) + vec[6:7]
    xo = _ln(x1 + m2, vec[7:8], vec[8:9])                  # residual + LN2 fused
    x_sc[...] = xo

    # Write back only the test-token rows, only after the last layer.
    @pl.when(l == nlayers - 1)
    def _():
        out_ref[0] = xo[T:, :].astype(out_ref.dtype)


def tabpfn_backbone(params, x_b, y_pad, eval_pos):
    """x_b: [B, S, F], y_pad: [B, S, 1] (zeros past eval_pos) -> [B, Nt, E] bf16."""
    B, S, F = x_b.shape
    E = params["bx"].shape[1]
    L = params["Wqkv"].shape[0]
    nhid = params["Wm1"].shape[2]
    Nt = S - eval_pos
    kernel = functools.partial(_backbone_kernel, nhead=params["nhead"],
                               eval_pos=eval_pos, nlayers=L)
    return pl.pallas_call(
        kernel,
        out_shape=jax.ShapeDtypeStruct((B, Nt, E), jnp.bfloat16),
        grid=(B, L),
        in_specs=[
            pl.BlockSpec((1, S, F), lambda b, l: (b, 0, 0)),       # x (per-batch)
            pl.BlockSpec((1, S, 1), lambda b, l: (b, 0, 0)),       # y padded
            pl.BlockSpec((F, E), lambda b, l: (0, 0)),             # Wx
            pl.BlockSpec((1, E), lambda b, l: (0, 0)),             # bx
            pl.BlockSpec((1, E), lambda b, l: (0, 0)),             # Wy
            pl.BlockSpec((1, E), lambda b, l: (0, 0)),             # by
            pl.BlockSpec((1, E, 3 * E), lambda b, l: (l, 0, 0)),   # Wqkv[l]
            pl.BlockSpec((1, E, E), lambda b, l: (l, 0, 0)),       # Wo[l]
            pl.BlockSpec((1, E, nhid), lambda b, l: (l, 0, 0)),    # Wm1[l]
            pl.BlockSpec((1, nhid, E), lambda b, l: (l, 0, 0)),    # Wm2[l]
            pl.BlockSpec((1, 9, E), lambda b, l: (l, 0, 0)),       # packed vectors[l]
            pl.BlockSpec((1, 1, nhid), lambda b, l: (l, 0, 0)),    # bm1[l]
        ],
        out_specs=pl.BlockSpec((1, Nt, E), lambda b, l: (b, 0, 0)),
        scratch_shapes=[pltpu.VMEM((S, E), jnp.float32)],
        compiler_params=pltpu.CompilerParams(
            dimension_semantics=("parallel", "arbitrary")),
    )(x_b, y_pad, params["Wx"], params["bx"], params["Wy"], params["by"],
      params["Wqkv"], params["Wo"], params["Wm1"], params["Wm2"],
      params["vecs"], params["bm1"])


# ----------------------------------------------------------------------------
# Decoder kernels: flat [B*Nt, E] slab, logits padded to 128 lanes
# ----------------------------------------------------------------------------

def _decoder_cls_kernel(tok_ref, wd1_ref, bd1_ref, wd2_ref, bd2_ref, o_ref):
    h = jax.nn.gelu(_bdot(tok_ref[...], wd1_ref[...]) + bd1_ref[...],
                    approximate=True)
    o_ref[...] = (_bdot(h, wd2_ref[...]) + bd2_ref[...]).astype(o_ref.dtype)


def _decoder_reg_kernel(tok_ref, wd1_ref, bd1_ref, wd2_ref, bd2_ref, bm_ref,
                        logits_ref, mean_ref, *, n_bars):
    h = jax.nn.gelu(_bdot(tok_ref[...], wd1_ref[...]) + bd1_ref[...],
                    approximate=True)
    logits = _bdot(h, wd2_ref[...]) + bd2_ref[...]        # [R, 128] (padded cols)
    logits_ref[...] = logits.astype(logits_ref.dtype)
    lg = logits[:, :n_bars]                               # [R, Nb]
    m = jnp.max(lg, axis=-1, keepdims=True)
    p = jnp.exp(lg - m)
    p = p / jnp.sum(p, axis=-1, keepdims=True)            # exact divide (accuracy)
    mean_ref[...] = jnp.sum(p * bm_ref[...], axis=-1,
                            keepdims=True).astype(mean_ref.dtype)


def decode_cls(tok_flat, params):
    R, E = tok_flat.shape
    nhid = params["Wd1"].shape[1]
    P = params["pad_out"]
    return pl.pallas_call(
        _decoder_cls_kernel,
        out_shape=jax.ShapeDtypeStruct((R, P), jnp.float32),
        grid=(1,),
        in_specs=[
            pl.BlockSpec((R, E), lambda i: (0, 0)),
            pl.BlockSpec((E, nhid), lambda i: (0, 0)),
            pl.BlockSpec((1, nhid), lambda i: (0, 0)),
            pl.BlockSpec((nhid, P), lambda i: (0, 0)),
            pl.BlockSpec((1, P), lambda i: (0, 0)),
        ],
        out_specs=pl.BlockSpec((R, P), lambda i: (0, 0)),
    )(tok_flat, params["Wd1"], params["bd1"], params["Wd2"], params["bd2"])


def decode_reg(tok_flat, params, bucket_means_flat):
    R, E = tok_flat.shape
    nhid = params["Wd1"].shape[1]
    P = params["pad_out"]
    Nb = params["n_out"]
    return pl.pallas_call(
        functools.partial(_decoder_reg_kernel, n_bars=Nb),
        out_shape=(jax.ShapeDtypeStruct((R, P), jnp.float32),
                   jax.ShapeDtypeStruct((R, 1), jnp.float32)),
        grid=(1,),
        in_specs=[
            pl.BlockSpec((R, E), lambda i: (0, 0)),
            pl.BlockSpec((E, nhid), lambda i: (0, 0)),
            pl.BlockSpec((1, nhid), lambda i: (0, 0)),
            pl.BlockSpec((nhid, P), lambda i: (0, 0)),
            pl.BlockSpec((1, P), lambda i: (0, 0)),
            pl.BlockSpec((R, Nb), lambda i: (0, 0)),
        ],
        out_specs=(pl.BlockSpec((R, P), lambda i: (0, 0)),
                   pl.BlockSpec((R, 1), lambda i: (0, 0))),
    )(tok_flat, params["Wd1"], params["bd1"], params["Wd2"], params["bd2"],
      bucket_means_flat)


# ----------------------------------------------------------------------------
# Parameter init (deterministic, nn.Linear-style uniform(+-1/sqrt(fan_in)))
# ----------------------------------------------------------------------------

def _dense_init(key, fan_in, fan_out):
    k1, k2 = jax.random.split(key)
    lim = 1.0 / math.sqrt(fan_in)
    w = jax.random.uniform(k1, (fan_in, fan_out), jnp.float32, -lim, lim)
    b = jax.random.uniform(k2, (fan_out,), jnp.float32, -lim, lim)
    return w, b


def init_params(key, n_features, emsize, nhead, nhid, nlayers, n_out, pad_out=128):
    Dh = emsize // nhead
    scale = 1.0 / math.sqrt(Dh)
    keys = jax.random.split(key, 4 + nlayers)
    Wx, bx = _dense_init(keys[0], n_features, emsize)
    Wy, by = _dense_init(keys[1], 1, emsize)

    Wqkv_l, Wo_l, Wm1_l, Wm2_l, vec_l, bm1_l = [], [], [], [], [], []
    ones = jnp.ones((emsize,), jnp.float32)
    zeros = jnp.zeros((emsize,), jnp.float32)
    for li in range(nlayers):
        lk = jax.random.split(keys[2 + li], 6)
        Wq, bq = _dense_init(lk[0], emsize, emsize)
        Wk, bk = _dense_init(lk[1], emsize, emsize)
        Wv, bv = _dense_init(lk[2], emsize, emsize)
        Wo, bo = _dense_init(lk[3], emsize, emsize)
        Wm1, bm1 = _dense_init(lk[4], emsize, nhid)
        Wm2, bm2 = _dense_init(lk[5], nhid, emsize)
        # Fused QKV weight; attention scale folded into the Q columns.
        Wqkv_l.append(jnp.concatenate([Wq * scale, Wk, Wv], axis=1))
        Wo_l.append(Wo)
        Wm1_l.append(Wm1)
        Wm2_l.append(Wm2)
        # Packed per-layer vectors: [bq*scale, bk, bv, bo, g1, b1, bm2, g2, b2]
        vec_l.append(jnp.stack([bq * scale, bk, bv, bo, ones, zeros,
                                bm2, ones, zeros], axis=0))
        bm1_l.append(bm1.reshape(1, nhid))

    Wd1, bd1 = _dense_init(keys[2 + nlayers], emsize, nhid)
    Wd2, bd2 = _dense_init(keys[3 + nlayers], nhid, n_out)
    # Pad decoder output to 128 lanes (lane-dense stores); extra columns are 0.
    Wd2p = jnp.zeros((nhid, pad_out), jnp.float32).at[:, :n_out].set(Wd2)
    bd2p = jnp.zeros((1, pad_out), jnp.float32).at[:, :n_out].set(bd2)

    return dict(
        Wx=Wx.astype(jnp.bfloat16), bx=bx.reshape(1, emsize),
        Wy=Wy, by=by.reshape(1, emsize),
        Wqkv=jnp.stack(Wqkv_l).astype(jnp.bfloat16),      # [L, E, 3E]
        Wo=jnp.stack(Wo_l).astype(jnp.bfloat16),          # [L, E, E]
        Wm1=jnp.stack(Wm1_l).astype(jnp.bfloat16),        # [L, E, nhid]
        Wm2=jnp.stack(Wm2_l).astype(jnp.bfloat16),        # [L, nhid, E]
        vecs=jnp.stack(vec_l),                            # [L, 9, E] f32
        bm1=jnp.stack(bm1_l),                             # [L, 1, nhid] f32
        Wd1=Wd1.astype(jnp.bfloat16), bd1=bd1.reshape(1, nhid),
        Wd2=Wd2p.astype(jnp.bfloat16), bd2=bd2p,
        nhead=nhead, n_out=n_out, pad_out=pad_out)


# ----------------------------------------------------------------------------
# TabPFN-style in-context transformer (model(train_x, train_y, test_x))
# ----------------------------------------------------------------------------

def tabpfn_model_forward(params, x_b, y_b, eval_pos):
    """x_b: [B, S, F], y_b: [B, T].  Returns test-token embeddings [B, Nt, E]."""
    B, S, F = x_b.shape
    T = eval_pos
    # TODO(synk): the y zero-padding could be folded into the backbone kernel
    # (pass y as [B, T, 1] and mask in-kernel) to drop this tiny host-side op.
    y_pad = jnp.zeros((B, S, 1), jnp.float32).at[:, :T, 0].set(y_b)
    return tabpfn_backbone(params, x_b, y_pad, T)


# ----------------------------------------------------------------------------
# FullSupportBarDistribution bucket means (half-normal edge buckets)
# ----------------------------------------------------------------------------

def full_support_bucket_means(borders_b):
    """borders_b: [B, Nb+1] -> per-bucket means [B, Nb]."""
    widths = borders_b[:, 1:] - borders_b[:, :-1]
    means = 0.5 * (borders_b[:, :-1] + borders_b[:, 1:])
    c = 0.6744897501960817           # HalfNormal(1).icdf(0.5)
    hn_mean = math.sqrt(2.0 / math.pi)
    left = borders_b[:, 1] - (widths[:, 0] / c) * hn_mean
    right = borders_b[:, -2] + (widths[:, -1] / c) * hn_mean
    means = means.at[:, 0].set(left)
    means = means.at[:, -1].set(right)
    return means


# ----------------------------------------------------------------------------
# EasyTabPFNV2.forward equivalent
# ----------------------------------------------------------------------------

def easy_tabpfn_forward(params_cls, params_reg, borders, x_src, y_src, task,
                        return_logits=False):
    """x_src: [B, S, F], y_src: [B, T, 1].  task in {'cls', 'reg'}."""
    eval_pos = y_src.shape[1]
    y_b = y_src[..., 0]                                        # [B, T]
    B, S, _ = x_src.shape
    Nt = S - eval_pos

    if task == "reg":
        params = params_reg
        y_mean = jnp.mean(y_b, axis=1)                         # [B]
        y_std = jnp.std(y_b, axis=1, ddof=1)                   # torch.std (unbiased)
        y_std = jnp.where(jnp.isfinite(y_std) & (y_std > 1e-9), y_std,
                          jnp.ones_like(y_std))                # guard NaN / const y
        y_norm = (y_b - y_mean[:, None]) / y_std[:, None]
        borders_b = borders[None, :] * y_std[:, None] + y_mean[:, None]  # [B, Nb+1]
        bucket_means = full_support_bucket_means(borders_b)              # [B, Nb]
        test_tok = tabpfn_model_forward(params, x_src, y_norm, eval_pos)  # [B,Nt,E]
        tok_flat = test_tok.reshape(B * Nt, -1)                # lane/sublane-dense slab
        bm_flat = jnp.repeat(bucket_means, Nt, axis=0)         # [B*Nt, Nb]
        logits_pad, mean = decode_reg(tok_flat, params, bm_flat)
        logits = logits_pad[:, :params["n_out"]].reshape(B, Nt, params["n_out"])
        output = mean.reshape(B, Nt)
    else:
        params = params_cls
        test_tok = tabpfn_model_forward(params, x_src, y_b, eval_pos)
        tok_flat = test_tok.reshape(B * Nt, -1)
        logits_pad = decode_cls(tok_flat, params)
        logits = logits_pad[:, :params["n_out"]].reshape(B, Nt, params["n_out"])
        output = logits

    if return_logits:
        return output, logits
    return output


# ----------------------------------------------------------------------------
# Driver
# ----------------------------------------------------------------------------

if __name__ == "__main__":
    B, S, F = 2, 12, 4
    eval_pos = 8                    # train positions; test = S - eval_pos = 4
    emsize, nhead, nhid, nlayers = 32, 4, 64, 2
    n_classes, n_bars = 10, 8

    key = jax.random.PRNGKey(0)
    kx, ky_reg, ky_cls = jax.random.split(key, 3)
    x = jax.random.normal(kx, (B, S, F), jnp.float32)
    y_reg = jax.random.normal(ky_reg, (B, eval_pos, 1), jnp.float32)
    y_cls = jax.random.randint(ky_cls, (B, eval_pos, 1), 0, n_classes).astype(jnp.float32)

    pkey = jax.random.PRNGKey(42)   # module default seed
    k_cls, k_reg = jax.random.split(pkey)
    params_cls = init_params(k_cls, F, emsize, nhead, nhid, nlayers, n_out=n_classes)
    params_reg = init_params(k_reg, F, emsize, nhead, nhid, nlayers, n_out=n_bars)
    borders = jnp.linspace(-3.0, 3.0, n_bars + 1).astype(jnp.float32)

    out_cls = easy_tabpfn_forward(params_cls, params_reg, borders, x, y_cls, "cls")
    out_reg, logits_reg = easy_tabpfn_forward(params_cls, params_reg, borders,
                                              x, y_reg, "reg", return_logits=True)
    jax.block_until_ready((out_cls, out_reg, logits_reg))

    assert out_cls.shape == (B, S - eval_pos, n_classes)
    assert out_reg.shape == (B, S - eval_pos)
    assert logits_reg.shape == (B, S - eval_pos, n_bars)
    assert jnp.all(jnp.isfinite(out_cls)) and jnp.all(jnp.isfinite(out_reg))
    print("KERNEL_OK")
</pallas_src>

<mosaic_0001>
module attributes {stable_mosaic.version = 11 : i64} {
  func.func @_backbone_kernel(%arg0: i32, %arg1: i32, %arg2: memref<1x12x4xf32, #tpu.memory_space<vmem>>, %arg3: memref<1x12x1xf32, #tpu.memory_space<vmem>>, %arg4: memref<4x32xbf16, #tpu.memory_space<vmem>>, %arg5: memref<1x32xf32, #tpu.memory_space<vmem>>, %arg6: memref<1x32xf32, #tpu.memory_space<vmem>>, %arg7: memref<1x32xf32, #tpu.memory_space<vmem>>, %arg8: memref<1x32x96xbf16, #tpu.memory_space<vmem>>, %arg9: memref<1x32x32xbf16, #tpu.memory_space<vmem>>, %arg10: memref<1x32x64xbf16, #tpu.memory_space<vmem>>, %arg11: memref<1x64x32xbf16, #tpu.memory_space<vmem>>, %arg12: memref<1x9x32xf32, #tpu.memory_space<vmem>>, %arg13: memref<1x1x64xf32, #tpu.memory_space<vmem>>, %arg14: memref<1x4x32xbf16, #tpu.memory_space<vmem>>, %arg15: memref<12x32xf32, #tpu.memory_space<vmem>>) attributes {dimension_semantics = [#tpu.dimension_semantics<parallel>, #tpu.dimension_semantics<arbitrary>], iteration_bounds = array<i64: 2, 2>, scalar_prefetch = 0 : i64, scratch_operands = 1 : i64, tpu.core_type = #tpu.core_type<tc>, window_params = [{transform_indices = @transform_0, window_bounds = array<i64: 1, 12, 4>}, {transform_indices = @transform_1, window_bounds = array<i64: 1, 12, 1>}, {pipeline_mode = #tpu.pipeline_mode<synchronous>, transform_indices = @transform_2, window_bounds = array<i64: 4, 32>}, {pipeline_mode = #tpu.pipeline_mode<synchronous>, transform_indices = @transform_3, window_bounds = array<i64: 1, 32>}, {pipeline_mode = #tpu.pipeline_mode<synchronous>, transform_indices = @transform_4, window_bounds = array<i64: 1, 32>}, {pipeline_mode = #tpu.pipeline_mode<synchronous>, transform_indices = @transform_5, window_bounds = array<i64: 1, 32>}, {transform_indices = @transform_6, window_bounds = array<i64: 1, 32, 96>}, {transform_indices = @transform_7, window_bounds = array<i64: 1, 32, 32>}, {transform_indices = @transform_8, window_bounds = array<i64: 1, 32, 64>}, {transform_indices = @transform_9, window_bounds = array<i64: 1, 64, 32>}, {transform_indices = @transform_10, window_bounds = array<i64: 1, 9, 32>}, {transform_indices = @transform_11, window_bounds = array<i64: 1, 1, 64>}, {transform_indices = @transform_12, window_bounds = array<i64: 1, 4, 32>}]} {
    %c0_i32 = arith.constant 0 : i32
    %0 = arith.cmpi eq, %arg1, %c0_i32 : i32
    %1 = arith.extui %0 : i1 to i32
    %c0_i32_0 = arith.constant 0 : i32
    %2 = arith.cmpi ne, %1, %c0_i32_0 : i32
    scf.if %2 {
      %c0_56 = arith.constant 0 : index
      %c0_57 = arith.constant 0 : index
      %c0_58 = arith.constant 0 : index
      %184 = vector.load %arg2[%c0_56, %c0_57, %c0_58] : memref<1x12x4xf32, #tpu.memory_space<vmem>>, vector<1x12x4xf32>
      %185 = vector.shape_cast %184 : vector<1x12x4xf32> to vector<12x4xf32>
      %c0_59 = arith.constant 0 : index
      %c0_60 = arith.constant 0 : index
      %c0_61 = arith.constant 0 : index
      %186 = vector.load %arg3[%c0_59, %c0_60, %c0_61] : memref<1x12x1xf32, #tpu.memory_space<vmem>>, vector<1x12x1xf32>
      %187 = vector.shape_cast %186 : vector<1x12x1xf32> to vector<12x1xf32>
      %c0_62 = arith.constant 0 : index
      %c0_63 = arith.constant 0 : index
      %188 = vector.load %arg4[%c0_62, %c0_63] : memref<4x32xbf16, #tpu.memory_space<vmem>>, vector<4x32xbf16>
      %189 = arith.truncf %185 : vector<12x4xf32> to vector<12x4xbf16>
      %cst_64 = arith.constant dense<0.000000e+00> : vector<12x32xf32>
      %190 = tpu.matmul %189, %188, %cst_64 {dimension_numbers = #tpu.dot_dimension_numbers<[1], [0], [0], [1], [0, 0, 1, 1], [], []>} : vector<12x4xbf16>, vector<4x32xbf16>, vector<12x32xf32> -> vector<12x32xf32>
      %c0_65 = arith.constant 0 : index
      %c0_66 = arith.constant 0 : index
      %191 = vector.load %arg5[%c0_65, %c0_66] : memref<1x32xf32, #tpu.memory_space<vmem>>, vector<1x32xf32>
      %192 = vector.broadcast %191 : vector<1x32xf32> to vector<12x32xf32>
      %193 = arith.addf %190, %192 : vector<12x32xf32>
      %c0_67 = arith.constant 0 : index
      %c0_68 = arith.constant 0 : index
      %194 = vector.load %arg6[%c0_67, %c0_68] : memref<1x32xf32, #tpu.memory_space<vmem>>, vector<1x32xf32>
      %195 = vector.broadcast %187 : vector<12x1xf32> to vector<12x32xf32>
      %196 = vector.broadcast %194 : vector<1x32xf32> to vector<12x32xf32>
      %197 = arith.mulf %195, %196 : vector<12x32xf32>
      %c0_69 = arith.constant 0 : index
      %c0_70 = arith.constant 0 : index
      %198 = vector.load %arg7[%c0_69, %c0_70] : memref<1x32xf32, #tpu.memory_space<vmem>>, vector<1x32xf32>
      %199 = vector.broadcast %198 : vector<1x32xf32> to vector<12x32xf32>
      %200 = arith.addf %197, %199 : vector<12x32xf32>
      %201 = tpu.iota {dimensions = array<i32: 0>} : vector<12x32xi32>
      %c8_i32 = arith.constant 8 : i32
      %202 = vector.broadcast %c8_i32 : i32 to vector<12x32xi32>
      %203 = arith.cmpi slt, %201, %202 : vector<12x32xi32>
      %cst_71 = arith.constant 0.000000e+00 : f32
      %204 = vector.broadcast %cst_71 : f32 to vector<12x32xf32>
      %205 = arith.select %203, %200, %204 : vector<12x32xi1>, vector<12x32xf32>
      %206 = arith.addf %193, %205 : vector<12x32xf32>
      %c0_72 = arith.constant 0 : index
      %c0_73 = arith.constant 0 : index
      %207 = vector.load %arg15[%c0_72, %c0_73] : memref<12x32xf32, #tpu.memory_space<vmem>>, vector<12x32xf32>
      tpu.vector_store %arg15[%c0_72, %c0_73], %206 {strides = array<i32>} : memref<12x32xf32, #tpu.memory_space<vmem>>, vector<12x32xf32>,
    } else {
    }
    %c0 = arith.constant 0 : index
    %c0_1 = arith.constant 0 : index
    %3 = vector.load %arg15[%c0, %c0_1] : memref<12x32xf32, #tpu.memory_space<vmem>>, vector<12x32xf32>
    %c0_2 = arith.constant 0 : index
    %c0_3 = arith.constant 0 : index
    %c0_4 = arith.constant 0 : index
    %4 = vector.load %arg12[%c0_2, %c0_3, %c0_4] : memref<1x9x32xf32, #tpu.memory_space<vmem>>, vector<1x9x32xf32>
    %5 = vector.shape_cast %4 : vector<1x9x32xf32> to vector<9x32xf32>
    %c0_5 = arith.constant 0 : index
    %c0_6 = arith.constant 0 : index
    %c0_7 = arith.constant 0 : index
    %6 = vector.load %arg8[%c0_5, %c0_6, %c0_7] : memref<1x32x96xbf16, #tpu.memory_space<vmem>>, vector<1x32x96xbf16>
    %7 = vector.shape_cast %6 : vector<1x32x96xbf16> to vector<32x96xbf16>
    %8 = arith.truncf %3 : vector<12x32xf32> to vector<12x32xbf16>
    %cst = arith.constant dense<0.000000e+00> : vector<12x96xf32>
    %9 = tpu.matmul %8, %7, %cst {dimension_numbers = #tpu.dot_dimension_numbers<[1], [0], [0], [1], [0, 0, 1, 1], [], []>} : vector<12x32xbf16>, vector<32x96xbf16>, vector<12x96xf32> -> vector<12x96xf32>
    %10 = vector.extract_strided_slice %9 {offsets = [0, 0], sizes = [12, 32], strides = [1, 1]} : vector<12x96xf32> to vector<12x32xf32>
    %11 = vector.extract_strided_slice %5 {offsets = [0, 0], sizes = [1, 32], strides = [1, 1]} : vector<9x32xf32> to vector<1x32xf32>
    %12 = vector.broadcast %11 : vector<1x32xf32> to vector<12x32xf32>
    %13 = arith.addf %10, %12 : vector<12x32xf32>
    %14 = vector.extract_strided_slice %9 {offsets = [0, 32], sizes = [8, 32], strides = [1, 1]} : vector<12x96xf32> to vector<8x32xf32>
    %15 = vector.extract_strided_slice %5 {offsets = [1, 0], sizes = [1, 32], strides = [1, 1]} : vector<9x32xf32> to vector<1x32xf32>
    %16 = vector.broadcast %15 : vector<1x32xf32> to vector<8x32xf32>
    %17 = arith.addf %14, %16 : vector<8x32xf32>
    %18 = vector.extract_strided_slice %9 {offsets = [0, 64], sizes = [8, 32], strides = [1, 1]} : vector<12x96xf32> to vector<8x32xf32>
    %19 = vector.extract_strided_slice %5 {offsets = [2, 0], sizes = [1, 32], strides = [1, 1]} : vector<9x32xf32> to vector<1x32xf32>
    %20 = vector.broadcast %19 : vector<1x32xf32> to vector<8x32xf32>
    %21 = arith.addf %18, %20 : vector<8x32xf32>
    %22 = vector.extract_strided_slice %13 {offsets = [0, 0], sizes = [12, 8], strides = [1, 1]} : vector<12x32xf32> to vector<12x8xf32>
    %23 = vector.extract_strided_slice %17 {offsets = [0, 0], sizes = [8, 8], strides = [1, 1]} : vector<8x32xf32> to vector<8x8xf32>
    %24 = vector.extract_strided_slice %21 {offsets = [0, 0], sizes = [8, 8], strides = [1, 1]} : vector<8x32xf32> to vector<8x8xf32>
    %25 = arith.truncf %22 : vector<12x8xf32> to vector<12x8xbf16>
    %26 = arith.truncf %23 : vector<8x8xf32> to vector<8x8xbf16>
    %cst_8 = arith.constant dense<0.000000e+00> : vector<12x8xf32>
    %27 = tpu.matmul %25, %26, %cst_8 {dimension_numbers = #tpu.dot_dimension_numbers<[1], [1], [0], [0], [0, 0, 1, 0], [], []>} : vector<12x8xbf16>, vector<8x8xbf16>, vector<12x8xf32> -> vector<12x8xf32>
    %cst_9 = arith.constant dense<0xFF800000> : vector<12xf32>
    %28 = vector.multi_reduction <maximumf>, %27, %cst_9 [1] : vector<12x8xf32> to vector<12xf32>
    %29 = vector.shape_cast %28 : vector<12xf32> to vector<12x1xf32>
    %30 = vector.broadcast %29 : vector<12x1xf32> to vector<12x8xf32>
    %31 = arith.subf %27, %30 : vector<12x8xf32>
    %32 = math.exp %31 : vector<12x8xf32>
    %cst_10 = arith.constant dense<0.000000e+00> : vector<12xf32>
    %33 = vector.multi_reduction <add>, %32, %cst_10 [1] : vector<12x8xf32> to vector<12xf32>
    %34 = vector.shape_cast %33 : vector<12xf32> to vector<12x1xf32>
    %35 = arith.truncf %32 : vector<12x8xf32> to vector<12x8xbf16>
    %36 = arith.truncf %24 : vector<8x8xf32> to vector<8x8xbf16>
    %cst_11 = arith.constant dense<0.000000e+00> : vector<12x8xf32>
    %37 = tpu.matmul %35, %36, %cst_11 {dimension_numbers = #tpu.dot_dimension_numbers<[1], [0], [0], [1], [0, 0, 1, 1], [], []>} : vector<12x8xbf16>, vector<8x8xbf16>, vector<12x8xf32> -> vector<12x8xf32>
    %38 = tpu.reciprocal %34 {approx = true} : vector<12x1xf32> -> vector<12x1xf32>
    %39 = vector.broadcast %38 : vector<12x1xf32> to vector<12x8xf32>
    %40 = arith.mulf %37, %39 : vector<12x8xf32>
    %41 = vector.extract_strided_slice %13 {offsets = [0, 8], sizes = [12, 8], strides = [1, 1]} : vector<12x32xf32> to vector<12x8xf32>
    %42 = vector.extract_strided_slice %17 {offsets = [0, 8], sizes = [8, 8], strides = [1, 1]} : vector<8x32xf32> to vector<8x8xf32>
    %43 = vector.extract_strided_slice %21 {offsets = [0, 8], sizes = [8, 8], strides = [1, 1]} : vector<8x32xf32> to vector<8x8xf32>
    %44 = arith.truncf %41 : vector<12x8xf32> to vector<12x8xbf16>
    %45 = arith.truncf %42 : vector<8x8xf32> to vector<8x8xbf16>
    %cst_12 = arith.constant dense<0.000000e+00> : vector<12x8xf32>
    %46 = tpu.matmul %44, %45, %cst_12 {dimension_numbers = #tpu.dot_dimension_numbers<[1], [1], [0], [0], [0, 0, 1, 0], [], []>} : vector<12x8xbf16>, vector<8x8xbf16>, vector<12x8xf32> -> vector<12x8xf32>
    %cst_13 = arith.constant dense<0xFF800000> : vector<12xf32>
    %47 = vector.multi_reduction <maximumf>, %46, %cst_13 [1] : vector<12x8xf32> to vector<12xf32>
    %48 = vector.shape_cast %47 : vector<12xf32> to vector<12x1xf32>
    %49 = vector.broadcast %48 : vector<12x1xf32> to vector<12x8xf32>
    %50 = arith.subf %46, %49 : vector<12x8xf32>
    %51 = math.exp %50 : vector<12x8xf32>
    %cst_14 = arith.constant dense<0.000000e+00> : vector<12xf32>
    %52 = vector.multi_reduction <add>, %51, %cst_14 [1] : vector<12x8xf32> to vector<12xf32>
    %53 = vector.shape_cast %52 : vector<12xf32> to vector<12x1xf32>
    %54 = arith.truncf %51 : vector<12x8xf32> to vector<12x8xbf16>
    %55 = arith.truncf %43 : vector<8x8xf32> to vector<8x8xbf16>
    %cst_15 = arith.constant dense<0.000000e+00> : vector<12x8xf32>
    %56 = tpu.matmul %54, %55, %cst_15 {dimension_numbers = #tpu.dot_dimension_numbers<[1], [0], [0], [1], [0, 0, 1, 1], [], []>} : vector<12x8xbf16>, vector<8x8xbf16>, vector<12x8xf32> -> vector<12x8xf32>
    %57 = tpu.reciprocal %53 {approx = true} : vector<12x1xf32> -> vector<12x1xf32>
    %58 = vector.broadcast %57 : vector<12x1xf32> to vector<12x8xf32>
    %59 = arith.mulf %56, %58 : vector<12x8xf32>
    %60 = vector.extract_strided_slice %13 {offsets = [0, 16], sizes = [12, 8], strides = [1, 1]} : vector<12x32xf32> to vector<12x8xf32>
    %61 = vector.extract_strided_slice %17 {offsets = [0, 16], sizes = [8, 8], strides = [1, 1]} : vector<8x32xf32> to vector<8x8xf32>
    %62 = vector.extract_strided_slice %21 {offsets = [0, 16], sizes = [8, 8], strides = [1, 1]} : vector<8x32xf32> to vector<8x8xf32>
    %63 = arith.truncf %60 : vector<12x8xf32> to vector<12x8xbf16>
    %64 = arith.truncf %61 : vector<8x8xf32> to vector<8x8xbf16>
    %cst_16 = arith.constant dense<0.000000e+00> : vector<12x8xf32>
    %65 = tpu.matmul %63, %64, %cst_16 {dimension_numbers = #tpu.dot_dimension_numbers<[1], [1], [0], [0], [0, 0, 1, 0], [], []>} : vector<12x8xbf16>, vector<8x8xbf16>, vector<12x8xf32> -> vector<12x8xf32>
    %cst_17 = arith.constant dense<0xFF800000> : vector<12xf32>
    %66 = vector.multi_reduction <maximumf>, %65, %cst_17 [1] : vector<12x8xf32> to vector<12xf32>
    %67 = vector.shape_cast %66 : vector<12xf32> to vector<12x1xf32>
    %68 = vector.broadcast %67 : vector<12x1xf32> to vector<12x8xf32>
    %69 = arith.subf %65, %68 : vector<12x8xf32>
    %70 = math.exp %69 : vector<12x8xf32>
    %cst_18 = arith.constant dense<0.000000e+00> : vector<12xf32>
    %71 = vector.multi_reduction <add>, %70, %cst_18 [1] : vector<12x8xf32> to vector<12xf32>
    %72 = vector.shape_cast %71 : vector<12xf32> to vector<12x1xf32>
    %73 = arith.truncf %70 : vector<12x8xf32> to vector<12x8xbf16>
    %74 = arith.truncf %62 : vector<8x8xf32> to vector<8x8xbf16>
    %cst_19 = arith.constant dense<0.000000e+00> : vector<12x8xf32>
    %75 = tpu.matmul %73, %74, %cst_19 {dimension_numbers = #tpu.dot_dimension_numbers<[1], [0], [0], [1], [0, 0, 1, 1], [], []>} : vector<12x8xbf16>, vector<8x8xbf16>, vector<12x8xf32> -> vector<12x8xf32>
    %76 = tpu.reciprocal %72 {approx = true} : vector<12x1xf32> -> vector<12x1xf32>
    %77 = vector.broadcast %76 : vector<12x1xf32> to vector<12x8xf32>
    %78 = arith.mulf %75, %77 : vector<12x8xf32>
    %79 = vector.extract_strided_slice %13 {offsets = [0, 24], sizes = [12, 8], strides = [1, 1]} : vector<12x32xf32> to vector<12x8xf32>
    %80 = vector.extract_strided_slice %17 {offsets = [0, 24], sizes = [8, 8], strides = [1, 1]} : vector<8x32xf32> to vector<8x8xf32>
    %81 = vector.extract_strided_slice %21 {offsets = [0, 24], sizes = [8, 8], strides = [1, 1]} : vector<8x32xf32> to vector<8x8xf32>
    %82 = arith.truncf %79 : vector<12x8xf32> to vector<12x8xbf16>
    %83 = arith.truncf %80 : vector<8x8xf32> to vector<8x8xbf16>
    %cst_20 = arith.constant dense<0.000000e+00> : vector<12x8xf32>
    %84 = tpu.matmul %82, %83, %cst_20 {dimension_numbers = #tpu.dot_dimension_numbers<[1], [1], [0], [0], [0, 0, 1, 0], [], []>} : vector<12x8xbf16>, vector<8x8xbf16>, vector<12x8xf32> -> vector<12x8xf32>
    %cst_21 = arith.constant dense<0xFF800000> : vector<12xf32>
    %85 = vector.multi_reduction <maximumf>, %84, %cst_21 [1] : vector<12x8xf32> to vector<12xf32>
    %86 = vector.shape_cast %85 : vector<12xf32> to vector<12x1xf32>
    %87 = vector.broadcast %86 : vector<12x1xf32> to vector<12x8xf32>
    %88 = arith.subf %84, %87 : vector<12x8xf32>
    %89 = math.exp %88 : vector<12x8xf32>
    %cst_22 = arith.constant dense<0.000000e+00> : vector<12xf32>
    %90 = vector.multi_reduction <add>, %89, %cst_22 [1] : vector<12x8xf32> to vector<12xf32>
    %91 = vector.shape_cast %90 : vector<12xf32> to vector<12x1xf32>
    %92 = arith.truncf %89 : vector<12x8xf32> to vector<12x8xbf16>
    %93 = arith.truncf %81 : vector<8x8xf32> to vector<8x8xbf16>
    %cst_23 = arith.constant dense<0.000000e+00> : vector<12x8xf32>
    %94 = tpu.matmul %92, %93, %cst_23 {dimension_numbers = #tpu.dot_dimension_numbers<[1], [0], [0], [1], [0, 0, 1, 1], [], []>} : vector<12x8xbf16>, vector<8x8xbf16>, vector<12x8xf32> -> vector<12x8xf32>
    %95 = tpu.reciprocal %91 {approx = true} : vector<12x1xf32> -> vector<12x1xf32>
    %96 = vector.broadcast %95 : vector<12x1xf32> to vector<12x8xf32>
    %97 = arith.mulf %94, %96 : vector<12x8xf32>
    %98 = tpu.concatenate %40, %59, %78, %97 in 1 : vector<12x8xf32>, vector<12x8xf32>, vector<12x8xf32>, vector<12x8xf32> -> vector<12x32xf32>
    %c0_24 = arith.constant 0 : index
    %c0_25 = arith.constant 0 : index
    %c0_26 = arith.constant 0 : index
    %99 = vector.load %arg9[%c0_24, %c0_25, %c0_26] : memref<1x32x32xbf16, #tpu.memory_space<vmem>>, vector<1x32x32xbf16>
    %100 = vector.shape_cast %99 : vector<1x32x32xbf16> to vector<32x32xbf16>
    %101 = arith.truncf %98 : vector<12x32xf32> to vector<12x32xbf16>
    %cst_27 = arith.constant dense<0.000000e+00> : vector<12x32xf32>
    %102 = tpu.matmul %101, %100, %cst_27 {dimension_numbers = #tpu.dot_dimension_numbers<[1], [0], [0], [1], [0, 0, 1, 1], [], []>} : vector<12x32xbf16>, vector<32x32xbf16>, vector<12x32xf32> -> vector<12x32xf32>
    %103 = vector.extract_strided_slice %5 {offsets = [3, 0], sizes = [1, 32], strides = [1, 1]} : vector<9x32xf32> to vector<1x32xf32>
    %104 = vector.broadcast %103 : vector<1x32xf32> to vector<12x32xf32>
    %105 = arith.addf %102, %104 : vector<12x32xf32>
    %106 = arith.addf %3, %105 : vector<12x32xf32>
    %107 = vector.extract_strided_slice %5 {offsets = [4, 0], sizes = [1, 32], strides = [1, 1]} : vector<9x32xf32> to vector<1x32xf32>
    %108 = vector.extract_strided_slice %5 {offsets = [5, 0], sizes = [1, 32], strides = [1, 1]} : vector<9x32xf32> to vector<1x32xf32>
    %cst_28 = arith.constant dense<0.000000e+00> : vector<12xf32>
    %109 = vector.multi_reduction <add>, %106, %cst_28 [1] : vector<12x32xf32> to vector<12xf32>
    %110 = vector.shape_cast %109 : vector<12xf32> to vector<12x1xf32>
    %cst_29 = arith.constant 3.200000e+01 : f32
    %111 = vector.broadcast %cst_29 : f32 to vector<12x1xf32>
    %112 = arith.divf %110, %111 : vector<12x1xf32>
    %113 = vector.broadcast %112 : vector<12x1xf32> to vector<12x32xf32>
    %114 = arith.subf %106, %113 : vector<12x32xf32>
    %115 = arith.mulf %114, %114 : vector<12x32xf32>
    %cst_30 = arith.constant dense<0.000000e+00> : vector<12xf32>
    %116 = vector.multi_reduction <add>, %115, %cst_30 [1] : vector<12x32xf32> to vector<12xf32>
    %117 = vector.shape_cast %116 : vector<12xf32> to vector<12x1xf32>
    %cst_31 = arith.constant 3.200000e+01 : f32
    %118 = vector.broadcast %cst_31 : f32 to vector<12x1xf32>
    %119 = arith.divf %117, %118 : vector<12x1xf32>
    %cst_32 = arith.constant 9.99999974E-6 : f32
    %120 = vector.broadcast %cst_32 : f32 to vector<12x1xf32>
    %121 = arith.addf %119, %120 : vector<12x1xf32>
    %122 = math.rsqrt %121 : vector<12x1xf32>
    %123 = vector.broadcast %122 : vector<12x1xf32> to vector<12x32xf32>
    %124 = arith.mulf %114, %123 : vector<12x32xf32>
    %125 = vector.broadcast %107 : vector<1x32xf32> to vector<12x32xf32>
    %126 = arith.mulf %124, %125 : vector<12x32xf32>
    %127 = vector.broadcast %108 : vector<1x32xf32> to vector<12x32xf32>
    %128 = arith.addf %126, %127 : vector<12x32xf32>
    %c0_33 = arith.constant 0 : index
    %c0_34 = arith.constant 0 : index
    %c0_35 = arith.constant 0 : index
    %129 = vector.load %arg10[%c0_33, %c0_34, %c0_35] : memref<1x32x64xbf16, #tpu.memory_space<vmem>>, vector<1x32x64xbf16>
    %130 = vector.shape_cast %129 : vector<1x32x64xbf16> to vector<32x64xbf16>
    %131 = arith.truncf %128 : vector<12x32xf32> to vector<12x32xbf16>
    %cst_36 = arith.constant dense<0.000000e+00> : vector<12x64xf32>
    %132 = tpu.matmul %131, %130, %cst_36 {dimension_numbers = #tpu.dot_dimension_numbers<[1], [0], [0], [1], [0, 0, 1, 1], [], []>} : vector<12x32xbf16>, vector<32x64xbf16>, vector<12x64xf32> -> vector<12x64xf32>
    %c0_37 = arith.constant 0 : index
    %c0_38 = arith.constant 0 : index
    %c0_39 = arith.constant 0 : index
    %133 = vector.load %arg13[%c0_37, %c0_38, %c0_39] : memref<1x1x64xf32, #tpu.memory_space<vmem>>, vector<1x1x64xf32>
    %134 = vector.shape_cast %133 : vector<1x1x64xf32> to vector<1x64xf32>
    %135 = vector.broadcast %134 : vector<1x64xf32> to vector<12x64xf32>
    %136 = arith.addf %132, %135 : vector<12x64xf32>
    %137 = arith.mulf %136, %136 : vector<12x64xf32>
    %138 = arith.mulf %136, %137 : vector<12x64xf32>
    %cst_40 = arith.constant 4.471500e-02 : f32
    %139 = vector.broadcast %cst_40 : f32 to vector<12x64xf32>
    %140 = arith.mulf %139, %138 : vector<12x64xf32>
    %141 = arith.addf %136, %140 : vector<12x64xf32>
    %cst_41 = arith.constant 0.797884583 : f32
    %142 = vector.broadcast %cst_41 : f32 to vector<12x64xf32>
    %143 = arith.mulf %142, %141 : vector<12x64xf32>
    %144 = math.tanh %143 : vector<12x64xf32>
    %cst_42 = arith.constant 1.000000e+00 : f32
    %145 = vector.broadcast %cst_42 : f32 to vector<12x64xf32>
    %146 = arith.addf %145, %144 : vector<12x64xf32>
    %cst_43 = arith.constant 5.000000e-01 : f32
    %147 = vector.broadcast %cst_43 : f32 to vector<12x64xf32>
    %148 = arith.mulf %147, %146 : vector<12x64xf32>
    %149 = arith.mulf %136, %148 : vector<12x64xf32>
    %c0_44 = arith.constant 0 : index
    %c0_45 = arith.constant 0 : index
    %c0_46 = arith.constant 0 : index
    %150 = vector.load %arg11[%c0_44, %c0_45, %c0_46] : memref<1x64x32xbf16, #tpu.memory_space<vmem>>, vector<1x64x32xbf16>
    %151 = vector.shape_cast %150 : vector<1x64x32xbf16> to vector<64x32xbf16>
    %152 = arith.truncf %149 : vector<12x64xf32> to vector<12x64xbf16>
    %cst_47 = arith.constant dense<0.000000e+00> : vector<12x32xf32>
    %153 = tpu.matmul %152, %151, %cst_47 {dimension_numbers = #tpu.dot_dimension_numbers<[1], [0], [0], [1], [0, 0, 1, 1], [], []>} : vector<12x64xbf16>, vector<64x32xbf16>, vector<12x32xf32> -> vector<12x32xf32>
    %154 = vector.extract_strided_slice %5 {offsets = [6, 0], sizes = [1, 32], strides = [1, 1]} : vector<9x32xf32> to vector<1x32xf32>
    %155 = vector.broadcast %154 : vector<1x32xf32> to vector<12x32xf32>
    %156 = arith.addf %153, %155 : vector<12x32xf32>
    %157 = arith.addf %128, %156 : vector<12x32xf32>
    %158 = vector.extract_strided_slice %5 {offsets = [7, 0], sizes = [1, 32], strides = [1, 1]} : vector<9x32xf32> to vector<1x32xf32>
    %159 = vector.extract_strided_slice %5 {offsets = [8, 0], sizes = [1, 32], strides = [1, 1]} : vector<9x32xf32> to vector<1x32xf32>
    %cst_48 = arith.constant dense<0.000000e+00> : vector<12xf32>
    %160 = vector.multi_reduction <add>, %157, %cst_48 [1] : vector<12x32xf32> to vector<12xf32>
    %161 = vector.shape_cast %160 : vector<12xf32> to vector<12x1xf32>
    %cst_49 = arith.constant 3.200000e+01 : f32
    %162 = vector.broadcast %cst_49 : f32 to vector<12x1xf32>
    %163 = arith.divf %161, %162 : vector<12x1xf32>
    %164 = vector.broadcast %163 : vector<12x1xf32> to vector<12x32xf32>
    %165 = arith.subf %157, %164 : vector<12x32xf32>
    %166 = arith.mulf %165, %165 : vector<12x32xf32>
    %cst_50 = arith.constant dense<0.000000e+00> : vector<12xf32>
    %167 = vector.multi_reduction <add>, %166, %cst_50 [1] : vector<12x32xf32> to vector<12xf32>
    %168 = vector.shape_cast %167 : vector<12xf32> to vector<12x1xf32>
    %cst_51 = arith.constant 3.200000e+01 : f32
    %169 = vector.broadcast %cst_51 : f32 to vector<12x1xf32>
    %170 = arith.divf %168, %169 : vector<12x1xf32>
    %cst_52 = arith.constant 9.99999974E-6 : f32
    %171 = vector.broadcast %cst_52 : f32 to vector<12x1xf32>
    %172 = arith.addf %170, %171 : vector<12x1xf32>
    %173 = math.rsqrt %172 : vector<12x1xf32>
    %174 = vector.broadcast %173 : vector<12x1xf32> to vector<12x32xf32>
    %175 = arith.mulf %165, %174 : vector<12x32xf32>
    %176 = vector.broadcast %158 : vector<1x32xf32> to vector<12x32xf32>
    %177 = arith.mulf %175, %176 : vector<12x32xf32>
    %178 = vector.broadcast %159 : vector<1x32xf32> to vector<12x32xf32>
    %179 = arith.addf %177, %178 : vector<12x32xf32>
    %c0_53 = arith.constant 0 : index
    %c0_54 = arith.constant 0 : index
    %180 = vector.load %arg15[%c0_53, %c0_54] : memref<12x32xf32, #tpu.memory_space<vmem>>, vector<12x32xf32>
    tpu.vector_store %arg15[%c0_53, %c0_54], %179 {strides = array<i32>} : memref<12x32xf32, #tpu.memory_space<vmem>>, vector<12x32xf32>,
    %c1_i32 = arith.constant 1 : i32
    %181 = arith.cmpi eq, %arg1, %c1_i32 : i32
    %182 = arith.extui %181 : i1 to i32
    %c0_i32_55 = arith.constant 0 : i32
    %183 = arith.cmpi ne, %182, %c0_i32_55 : i32
    scf.if %183 {
      %184 = vector.extract_strided_slice %179 {offsets = [8, 0], sizes = [4, 32], strides = [1, 1]} : vector<12x32xf32> to vector<4x32xf32>
      %185 = arith.truncf %184 : vector<4x32xf32> to vector<4x32xbf16>
      %c0_56 = arith.constant 0 : index
      %c0_57 = arith.constant 0 : index
      %c0_58 = arith.constant 0 : index
      %186 = vector.load %arg14[%c0_56, %c0_57, %c0_58] : memref<1x4x32xbf16, #tpu.memory_space<vmem>>, vector<1x4x32xbf16>
      %187 = vector.shape_cast %186 : vector<1x4x32xbf16> to vector<4x32xbf16>
      %188 = vector.shape_cast %185 : vector<4x32xbf16> to vector<1x4x32xbf16>
      tpu.vector_store %arg14[%c0_56, %c0_57, %c0_58], %188 {strides = array<i32>} : memref<1x4x32xbf16, #tpu.memory_space<vmem>>, vector<1x4x32xbf16>,
    } else {
    }
    return
  }
  func.func @transform_0(%arg0: i32, %arg1: i32) -> (i32, i32, i32) {
    %c0_i32 = arith.constant 0 : i32
    %c0_i32_0 = arith.constant 0 : i32
    %c0_i32_1 = arith.constant 0 : i32
    return %arg0, %c0_i32, %c0_i32_0 : i32, i32, i32
  }
  func.func @transform_1(%arg0: i32, %arg1: i32) -> (i32, i32, i32) {
    %c0_i32 = arith.constant 0 : i32
    %c0_i32_0 = arith.constant 0 : i32
    %c0_i32_1 = arith.constant 0 : i32
    return %arg0, %c0_i32, %c0_i32_0 : i32, i32, i32
  }
  func.func @transform_2(%arg0: i32, %arg1: i32) -> (i32, i32) {
    %c0_i32 = arith.constant 0 : i32
    %c0_i32_0 = arith.constant 0 : i32
    %c0_i32_1 = arith.constant 0 : i32
    return %c0_i32, %c0_i32_0 : i32, i32
  }
  func.func @transform_3(%arg0: i32, %arg1: i32) -> (i32, i32) {
    %c0_i32 = arith.constant 0 : i32
    %c0_i32_0 = arith.constant 0 : i32
    %c0_i32_1 = arith.constant 0 : i32
    return %c0_i32, %c0_i32_0 : i32, i32
  }
  func.func @transform_4(%arg0: i32, %arg1: i32) -> (i32, i32) {
    %c0_i32 = arith.constant 0 : i32
    %c0_i32_0 = arith.constant 0 : i32
    %c0_i32_1 = arith.constant 0 : i32
    return %c0_i32, %c0_i32_0 : i32, i32
  }
  func.func @transform_5(%arg0: i32, %arg1: i32) -> (i32, i32) {
    %c0_i32 = arith.constant 0 : i32
    %c0_i32_0 = arith.constant 0 : i32
    %c0_i32_1 = arith.constant 0 : i32
    return %c0_i32, %c0_i32_0 : i32, i32
  }
  func.func @transform_6(%arg0: i32, %arg1: i32) -> (i32, i32, i32) {
    %c0_i32 = arith.constant 0 : i32
    %c0_i32_0 = arith.constant 0 : i32
    %c0_i32_1 = arith.constant 0 : i32
    return %arg1, %c0_i32, %c0_i32_0 : i32, i32, i32
  }
  func.func @transform_7(%arg0: i32, %arg1: i32) -> (i32, i32, i32) {
    %c0_i32 = arith.constant 0 : i32
    %c0_i32_0 = arith.constant 0 : i32
    %c0_i32_1 = arith.constant 0 : i32
    return %arg1, %c0_i32, %c0_i32_0 : i32, i32, i32
  }
  func.func @transform_8(%arg0: i32, %arg1: i32) -> (i32, i32, i32) {
    %c0_i32 = arith.constant 0 : i32
    %c0_i32_0 = arith.constant 0 : i32
    %c0_i32_1 = arith.constant 0 : i32
    return %arg1, %c0_i32, %c0_i32_0 : i32, i32, i32
  }
  func.func @transform_9(%arg0: i32, %arg1: i32) -> (i32, i32, i32) {
    %c0_i32 = arith.constant 0 : i32
    %c0_i32_0 = arith.constant 0 : i32
    %c0_i32_1 = arith.constant 0 : i32
    return %arg1, %c0_i32, %c0_i32_0 : i32, i32, i32
  }
  func.func @transform_10(%arg0: i32, %arg1: i32) -> (i32, i32, i32) {
    %c0_i32 = arith.constant 0 : i32
    %c0_i32_0 = arith.constant 0 : i32
    %c0_i32_1 = arith.constant 0 : i32
    return %arg1, %c0_i32, %c0_i32_0 : i32, i32, i32
  }
  func.func @transform_11(%arg0: i32, %arg1: i32) -> (i32, i32, i32) {
    %c0_i32 = arith.constant 0 : i32
    %c0_i32_0 = arith.constant 0 : i32
    %c0_i32_1 = arith.constant 0 : i32
    return %arg1, %c0_i32, %c0_i32_0 : i32, i32, i32
  }
  func.func @transform_12(%arg0: i32, %arg1: i32) -> (i32, i32, i32) {
    %c0_i32 = arith.constant 0 : i32
    %c0_i32_0 = arith.constant 0 : i32
    %c0_i32_1 = arith.constant 0 : i32
    return %arg0, %c0_i32, %c0_i32_0 : i32, i32, i32
  }
}

</mosaic_0001>

<bundles_post_ra>
// kernel: tpu_custom_call.1
= control target key start
LH: loop header
LB: loop body
LE: loop exit
PB: predicated region body
PF: predicated region fallthrough
CT: control target
= control target key end

     0   :  { %s2650_s0 = inlined_call_operand.vmem [shape: f32[2,12,4], index: 0, kind: input, shape index: {}]   ;;  %s2651_s1 = inlined_call_operand.vmem [shape: f32[2,12,1], index: 1, kind: input, shape index: {}]   ;;  %s2652_s2 = inlined_call_operand.vmem [shape: bf16[4,32], index: 2, kind: input, shape index: {}]   ;;  %s2653_s3 = inlined_call_operand.vmem [shape: f32[1,32], index: 3, kind: input, shape index: {}]   ;;  %s2654_s4 = inlined_call_operand.vmem [shape: f32[1,32], index: 4, kind: input, shape index: {}]   ;;  %s2655_s5 = inlined_call_operand.vmem [shape: f32[1,32], index: 5, kind: input, shape index: {}]   ;;  %s2656_s6 = inlined_call_operand.vmem [shape: bf16[2,32,96], index: 6, kind: input, shape index: {}]   ;;  %s2657_s7 = inlined_call_operand.vmem [shape: bf16[2,32,32], index: 7, kind: input, shape index: {}]   ;;  %s2658_s8 = inlined_call_operand.vmem [shape: bf16[2,32,64], index: 8, kind: input, shape index: {}]   ;;  %s2659_s9 = inlined_call_operand.vmem [shape: bf16[2,64,32], index: 9, kind: input, shape index: {}]   ;;  %s2660_s10 = inlined_call_operand.vmem [shape: f32[2,9,32], index: 10, kind: input, shape index: {}]   ;;  %s2661_s11 = inlined_call_operand.vmem [shape: f32[2,1,64], index: 11, kind: input, shape index: {}]   ;;  %s2662_s12 = inlined_call_operand.hbm [shape: bf16[2,4,32], index: 12, kind: output, shape index: {}]  }
   0x1   :  { %2677 = sst [smem:[#allocation18_spill]] %s2650_s0 }
   0x2   :  { %2678 = sst [smem:[#allocation19_spill]] %s2651_s1 }
   0x3   :  { %2679 = sst [smem:[#allocation20_spill]] %s2653_s3 }
   0x4   :  { %2680 = sst [smem:[#allocation21_spill]] %s2662_s12 }
   0x5   :  { %17 = vsyncpa [#allocation4], 0 }
   0x6   :  { %19 = vsyncpa [#allocation4 + $0x1], 0  ;;  %s2302_s21 = smov 0   ;;  %s2304_s22 = smov 0  }
   0x7   :  { %s2306_s23 = smov 0   ;;  %s2308_s24 = smov 0  }
   0x8   :  { %s2310_s25 = smov 0   ;;  %s2312_s26 = smov 0  }
   0x9   :  { %s2314_s27 = smov 0   ;;  %s2316_s28 = smov 0  }
   0xa LB: > { %2681 = sst [smem:[#allocation6_spill]] %s2186_s21  ;;  %s1776_s29 = sadd.s32 4294967295, %s2214_s28   ;;  %s2214_s28 = sphi %s2316_s28, %s25_s28   ;;  %s2210_s27 = sphi %s2314_s27, %s2712_s27   ;;  %s2206_s26 = sphi %s2312_s26, %s2711_s26   ;;  %s2202_s25 = sphi %s2310_s25, %s2710_s25   ;;  %s2198_s24 = sphi %s2308_s24, %s2709_s24   ;;  %s2194_s23 = sphi %s2306_s23, %s2708_s23   ;;  %s2190_s22 = sphi %s2304_s22, %s2707_s22   ;;  %s2186_s21 = sphi %s2302_s21, %s2706_s21  }
   0xb   : > { %2682 = sst [smem:[#allocation7_spill]] %s2190_s22  ;;  %s1777_s30 = sadd.s32 4294967294, %s2214_s28  }
   0xc   : > { %2683 = sst [smem:[#allocation8_spill]] %s2194_s23  ;;  %s34_s13 = sadd.s32 1, %s2206_s26 }
   0xd   : > { %2684 = sst [smem:[#allocation9_spill]] %s2202_s25  ;;  %p35_p0 = scmp.ge.s32.totalorder %s34_s13, 2 }
   0xe   : > { %2685 = sst [smem:[#allocation10_spill]] %s2206_s26  ;;  %s37_s14 = sadd.s32 1, %s2210_s27 }
   0xf   : > { %2686 = sst [smem:[#allocation11_spill]] %s2210_s27  ;;  %p346_p1 = scmp.ne.s32.totalorder %s2194_s23, %s2190_s22 }
  0x10   : > { %2687 = sst [smem:[#allocation12_spill]] %s2214_s28  ;;  %p347_p2 = scmp.eq.s32.totalorder %s1776_s29, 3 }
  0x11   : > { %s2714_s13 = smov (%p35_p0, %s34_s13), 0  ;;  %s2716_s14 = smov (!%p35_p0, %s37_s14), %s2210_s27 }
  0x12   : > { %2688 = sst [smem:[#allocation13_spill]] %s2714_s13  ;;  %p2351_p3 = por %p347_p2, %p346_p1 }
  0x13   : > { %p352_p4 = scmp.ne.s32.totalorder %s2190_s22, %s2186_s21  ;;  %p39_p5 = scmp.ge.s32.totalorder %s2716_s14, 2 }
  0x14   : > { %s2689_s15 = scalar_select %p2351_p3, 1, 0 }
  0x15   : > { %p353_p6 = scmp.eq.s32.totalorder %s1777_s30, 3  ;;  %p1780_p7 = scmp.ge.s32.totalorder %s2214_s28, 1 }
  0x16   : > { %2690 = sst [smem:[#allocation14_spill]] %s2689_s15  ;;  %p445_p8 = scmp.lt.s32.totalorder %s2214_s28, 5 }
  0x17   : > { %s2718_s14 = smov (%p39_p5, %s2716_s14), 0  ;;  %p2361_p9 = por %p353_p6, %p352_p4 }
  0x18   : > { %2691 = sst [smem:[#allocation15_spill]] %s2718_s14  ;;  %p446_p10 = pnand %p1780_p7, %p445_p8 }
  0x19   : > { %s2692_s16 = scalar_select %p2361_p9, 1, 0 }
  0x1a   : > { %s333_s17 = ssub.s32 %s2210_s27, %s2718_s14  ;;  %s336_s18 = sadd.s32 1, %s2194_s23 }
  0x1b   : > { %2693 = sst [smem:[#allocation16_spill]] %s2692_s16  ;;  %p334_p11 = scmp.eq.s32.totalorder %s333_s17, 0 }
  0x1c   : > { %449 = sbr.rel (%p446_p10) target bundleno = 2727 (0xaa7), region = 68  ;;  %s2668_s20 = sand.u32 (!%p446_p10), 1, %s2190_s22  }
  0x1d   : > { %s2369_s19 = scalar_select %p334_p11, %s2194_s23, %s336_s18  }
  0x1e   : > { %p520_p12 = scmp.lt.s32.totalorder (!%p446_p10), %s2202_s25, 1  ;;  %s2375_s29 = sshll.u32 (!%p446_p10), %s2668_s20, 1 }
  0x1f   : > { %2694 = sst [smem:[#allocation17_spill]] %s2369_s19  ;;  %p530_p13 = scmp.lt.s32.totalorder (!%p446_p10), %s2198_s24, 1 }
  0x20   : > { %s2695_s0 = sld [smem:[#allocation18_spill]] (!%p446_p10)  ;;  %s2696_s1 = sld [smem:[#allocation19_spill]] (!%p446_p10) }
  0x21   : > { %s519_s15 = scalar_lea.vmem (!%p446_p10), [#allocation3], %s2375_s29  ;;  %p1796_p0 = scmp.ne.s32.totalorder (!%p446_p10), %s2198_s24, 0 }
  0x23   : > { %s521_s30 = scalar_select %p520_p12, %s2202_s25, 1 }
  0x24   : > { %s2380_s14 = scalar_select %p530_p13, %s2198_s24, 1 }
  0x25   : > { %s1830_s17 = sshll.u32 %s521_s30, 4  ;;  %562 = sbr.rel (%p1796_p0) target bundleno = 260 (0x104), region = 72  ;;  %v567_v0 = vld [vmem:[%s2652_s2] sm:$0x3] (!%p1796_p0)  ;;  %vm580_vm0 = vcmask (!%p1796_p0), 1041408   ;;  %v2216_v2 = vmov (!%p1796_p0), 0.0  }
  0x26   : > { %s524_s27 = scalar_lea.vmem %s2695_s0, %s1830_s17  ;;  %s529_s23 = scalar_lea.vmem %s2696_s1, %s1830_s17  ;;  %1869 = vmatprep.subr.bf16.mxu0 (!%p1796_p0), %v2216_v2  ;;  %v582_v3 = vsel (!%p1796_p0), %vm580_vm0, %v567_v0, 0  ;;  %vm2217_vm1 = vmmov (!%p1796_p0), 0   ;;  %vm576_vm2 = vcmask (!%p1796_p0), 31744   ;;  %v2218_v7 = vmov (!%p1796_p0), 0   ;;  %v1799_v8 = vld [vmem:[%s2654_s4] ss:$0 sm:$0xff] (!%p1796_p0) }
  0x27   : > { %s1832_s16 = sshll.u32 %s2380_s14, 4  ;;  %s1835_s20 = sshll.u32 %s2380_s14, 5  ;;  %v563_v1 = vld [vmem:[%s524_s27] sm:$0xff] (!%p1796_p0)  ;;  %1871 = vmatprep.mubr.msk.bf16.mxu0 (!%p1796_p0), %vm2217_vm1, %v2216_v2  ;;  %v564_v4 = vld [vmem:[%s524_s27 + $0x8] sm:$0xf] (!%p1796_p0)  ;;  %1870 = vmatpush3.bf16.msra.mxu0 (!%p1796_p0), %v582_v3  ;;  %vm662_vm3 = vcmask (!%p1796_p0), 261120  }
  0x28   : > { %s2393_s12 = scalar_lea.vmem %s2656_s6, %s1832_s16  ;;  %s2398_s25 = scalar_lea.vmem %s2657_s7, %s1832_s16  ;;  %v565_v5 = vld [vmem:[%s529_s23] sm:$0xff] (!%p1796_p0)  ;;  %v568_v6 = vpack.c.bf16 (!%p1796_p0), %v564_v4, %v563_v1  ;;  %2050 = vset.pattern.permute.xlu0 (!%p1796_p0), %v2218_v7  ;;  %vm664_vm4 = vcmask (!%p1796_p0), 257024  }
  0x29   : > { %s2403_s13 = scalar_lea.vmem %s2658_s8, %s1832_s16  ;;  %s2408_s19 = scalar_lea.vmem %s2659_s9, %s1835_s20  ;;  %628 = vperm.xlu0 (!%p1796_p0), %2050, %v565_v5   ;;  %v1800_v11 = vld [vmem:[%s2655_s5] ss:$0 sm:$0xff] (!%p1796_p0) }
  0x2a   : > { %s2413_s21 = scalar_lea.vmem %s2660_s10, %s1832_s16  ;;  %s557_s22 = scalar_lea.vmem %s2661_s11, %s2380_s14  ;;  %1872 = vmatmul.mubr.msk.bf16.vlgmr.msra.gmra.mrb[0].mxu0 (!%p1796_p0), %vm576_vm2, %v568_v6 }
  0x2b   : > { %s2697_s23 = sld [smem:[#allocation20_spill]] (!%p1796_p0) }
  0x31   : > { %v1797_v12 = vld [vmem:[%s2697_s23] ss:$0 sm:$0xff] }
  0xa8   : > { %v629_v9 = vpop.permute.xlu0 %628 }
  0xa9   : > { %v642_v10 = vmul.f32 %v1799_v8, %v629_v9 }
  0xab   : > { %v651_v13 = vadd.f32 %v1800_v11, %v642_v10 }
  0xfd   : > { %v618_v14 = vpop.f32.mrb[0].mxu0 }
  0xfe   : > { %v619_v15 = vadd.f32 %v1797_v12, %v618_v14  ;;  %v1873_v16 = vpop.f32.mrb[1].mxu0 }
  0xff   : > { %v621_v17 = vpop.f32.mrb[2].mxu0 }
 0x100   : > { %v660_v18 = vadd.f32 %v651_v13, %v619_v15  ;;  %v622_v19 = vadd.f32 %v1797_v12, %v621_v17  ;;  %v1874_v20 = vpop.f32.mrb[3].mxu0 }
 0x102   : > { %663 = vst.msk [vmem:[#allocation2] sm:$0xff] %vm662_vm3, %v660_v18 }
 0x103   : > { %665 = vst.msk [vmem:[#allocation2 + $0x8] sm:$0xf] %vm664_vm4, %v622_v19 }
 0x104 PF: > { %v2066_v21 = vld [vmem:[%s2393_s12] sm:$0xff]   ;;  %v732_v22 = vlaneseq  ;;  %v2219_v23 = vmov 0.0   ;;  %v2067_v24 = vld [vmem:[%s2393_s12 + $0x8] sm:$0xff]   ;;  %vm2220_vm5 = vmmov 0   ;;  %vm687_vm6 = vcmask 261120   ;;  %s2221_s12 = smov 32  }
 0x105   : > { %1875 = vmatprep.subr.bf16.mxu0 %v2219_v23  ;;  %1883 = vmatprep.subr.bf16.mxu1 %v2219_v23  ;;  %v2447_v28 = vld [vmem:[%s2413_s21] sm:$0xff]  ;;  %s2222_s26 = smov 88   ;;  %s2223_s17 = smov 96   ;;  %vm761_vm7 = vcmask 64512   ;;  %vm812_vm8 = vcmask 60416   ;;  %vm836_vm9 = vcmask 1043456  }
 0x106   : > { %1876 = vmatpush3.bf16.msra.mxu0 %v2066_v21  ;;  %1879 = vmatprep.mubr.msk.bf16.mxu0 %vm2220_vm5, %v2219_v23  ;;  %v2443_v27 = vshrl.u32 %v732_v22, 7  ;;  %s2224_s28 = smov 80   ;;  %s2225_s3 = smov 120   ;;  %vm1281_vm10 = vcmask 130048   ;;  %vm1284_vm11 = vcmask 195584   ;;  %vm1357_vm12 = vcmask 257024  }
 0x107   : > { %1877 = vmatprep.subr.bf16.mxu0 %v2219_v23  ;;  %1885 = vmatprep.mubr.msk.bf16.mxu1 %vm2220_vm5, %v2219_v23  ;;  %s2226_s30 = smov 72   ;;  %s2227_s0 = smov 112   ;;  %vm1517_vm13 = vcmask 523264  }
 0x108   : > { %v740_v29 = vsub.s32 1, %v2443_v27  ;;  %v734_v32 = vsub.s32 0, %v2443_v27  ;;  %v749_v44 = vsub.s32 2, %v2443_v27  ;;  %s2228_s1 = smov 64   ;;  %s2229_s16 = smov 104  }
 0x109   : > { %v2439_v25 = vld [vmem:[#allocation2] sm:$0xff]  ;;  %s2230_s20 = smov 56   ;;  %s2231_s18 = smov 48  }
 0x10a   : > { %v2441_v26 = vld [vmem:[#allocation2 + $0x8] sm:$0xf]  ;;  %1878 = vmatpush3.bf16.msra.mxu0 %v2067_v24  ;;  %v741_v31 = vrot.slane %v2447_v28, %v740_v29  ;;  %v735_v34 = vrot.slane %v2447_v28, %v734_v32  ;;  %v750_v45 = vrot.slane %v2447_v28, %v749_v44  ;;  %s2232_s27 = smov 40   ;;  %s2233_s23 = smov 8  }
 0x10b   : > { %v674_v30 = vpack.c.bf16 %v2441_v26, %v2439_v25  ;;  %1889 = vmatprep.subr.bf16.mxu0 %v2219_v23  ;;  %p1825_p1 = scmp.ne.s32.totalorder %s2198_s24, 1 }
 0x10c   : > { %743 = vrot.lane.b32.xlu0 %v741_v31, %s2221_s12  ;;  %s2234_s12 = smov 16   ;;  %vm1609_vm14 = vcmask (!%p1825_p1), 254976  }
 0x10d   : > { %1880 = vmatmul.mubr.msk.bf16.vlgmr.msra.gmra.mrb[0].mxu0 %vm687_vm6, %v674_v30 }
 0x10e   : > { %1891 = vmatprep.mubr.msk.bf16.mxu0 %vm2220_vm5, %v2219_v23 }
 0x17e   : > { %v744_v33 = vpop.permute.xlu0 %743 }
 0x1e0   : > { %v2461_v35 = vpop.f32.mrb[0].mxu0 }
 0x1e1   : > { %v746_v36 = vadd.f32 %v744_v33, %v2461_v35  ;;  %v1881_v37 = vpop.f32.mrb[1].mxu0  ;;  %v736_v40 = vadd.f32 %v735_v34, %v2461_v35 }
 0x1e2   : > { %v728_v38 = vpop.f32.mrb[2].mxu0 }
 0x1e3   : > { %v757_v39 = vpack.c.bf16 %v746_v36, %v746_v36  ;;  %v737_v41 = vadd.f32 %v735_v34, %v728_v38  ;;  %v1882_v42 = vpop.f32.mrb[3].mxu0 }
 0x1e5   : > { %v756_v43 = vpack.c.bf16 %v737_v41, %v736_v40  ;;  %888 = vrot.lane.b32.xlu1 %v757_v39, %s2222_s26  ;;  %759 = vrot.lane.b32.xlu0 %v757_v39, %s2223_s17  ;;  %s2235_s26 = smov 24  }
 0x1e9   : > { %1011 = vrot.lane.b32.xlu0 %v757_v39, %s2224_s28  ;;  %886 = vrot.lane.b32.xlu1 %v756_v43, %s2225_s3 }
 0x1ed   : > { %1134 = vrot.lane.b32.xlu0 %v757_v39, %s2226_s30  ;;  %1009 = vrot.lane.b32.xlu1 %v756_v43, %s2227_s0 }
 0x1f1   : > { %752 = vrot.lane.b32.xlu0 %v750_v45, %s2228_s1  ;;  %1132 = vrot.lane.b32.xlu1 %v756_v43, %s2229_s16 }
 0x257   : > { %v760_v46 = vpop.permute.xlu0 %759  ;;  %v889_v48 = vpop.permute.xlu1 %888 }
 0x258   : > { %v766_v47 = vsel %vm761_vm7, %v760_v46, 0  ;;  %v894_v49 = vsel %vm761_vm7, %v889_v48, 0 }
 0x259   : > { %1884 = vmatpush3.bf16.xpose.msra.mxu1 %v766_v47 }
 0x25a   : > { %1895 = vmatprep.subr.bf16.mxu1 %v2219_v23 }
 0x25b   : > { %v1012_v50 = vpop.permute.xlu0 %1011  ;;  %v887_v51 = vpop.permute.xlu1 %886 }
 0x25c   : > { %v1017_v52 = vsel %vm761_vm7, %v1012_v50, 0 }
 0x25f   : > { %v1135_v53 = vpop.permute.xlu0 %1134  ;;  %v1010_v54 = vpop.permute.xlu1 %1009 }
 0x260   : > { %1886 = vmatmul.mubr.msk.bf16.vlgmr.msra.gmra.mrb[0].mxu1 %vm761_vm7, %v756_v43  ;;  %v1140_v55 = vsel %vm761_vm7, %v1135_v53, 0 }
 0x261   : > { %1896 = vmatpush3.bf16.xpose.msra.mxu1 %v894_v49  ;;  %1897 = vmatprep.mubr.msk.bf16.mxu1 %vm2220_vm5, %v2219_v23 }
 0x262   : > { %1907 = vmatprep.subr.bf16.mxu1 %v2219_v23 }
 0x263   : > { %v1133_v56 = vpop.permute.xlu1 %1132  ;;  %v753_v2 = vpop.permute.xlu0 %752 }
 0x264   : > { %v755_v5 = vadd.f32 %v753_v2, %v2461_v35 }
 0x266   : > { %v829_v7 = vpack.c.bf16 %v755_v5, %v755_v5 }
 0x268   : > { %1898 = vmatmul.mubr.msk.bf16.vlgmr.msra.gmra.mrb[4].mxu1 %vm761_vm7, %v887_v51 }
 0x269   : > { %1908 = vmatpush3.bf16.xpose.msra.mxu1 %v1017_v52  ;;  %1909 = vmatprep.mubr.msk.bf16.mxu1 %vm2220_vm5, %v2219_v23 }
 0x26a   : > { %1919 = vmatprep.subr.bf16.mxu1 %v2219_v23 }
 0x270   : > { %1910 = vmatmul.mubr.msk.bf16.vlgmr.msra.gmra.mrb[8].mxu1 %vm761_vm7, %v1010_v54 }
 0x271   : > { %1920 = vmatpush3.bf16.xpose.msra.mxu1 %v1140_v55  ;;  %1921 = vmatprep.mubr.msk.bf16.mxu1 %vm2220_vm5, %v2219_v23 }
 0x272   : > { %1931 = vmatprep.subr.bf16.mxu1 %v2219_v23 }
 0x278   : > { %1922 = vmatmul.mubr.msk.bf16.vlgmr.msra.gmra.mrb[12].mxu1 %vm761_vm7, %v1133_v56 }
 0x279   : > { %1935 = vmatprep.mubr.msk.bf16.mxu1 %vm2220_vm5, %v2219_v23 }
 0x333   : > { %v802_v57 = vpop.f32.mrb[0].mxu1 }
 0x334   : > { %v1887_v58 = vpop.f32.mrb[1].mxu1  ;;  %v809_v59 = vsel %vm761_vm7, %v802_v57, -inf }
 0x335   : > { %810 = vmax.xlane.f32.xlu1 %v809_v59  ;;  %v805_v60 = vpop.f32.mrb[2].mxu1 }
 0x336   : > { %v1888_v61 = vpop.f32.mrb[3].mxu1  ;;  %v813_v62 = vsel %vm812_vm8, %v805_v60, -inf }
 0x337   : > { %814 = vmax.xlane.f32.xlu0 %v813_v62 }
 0x33b   : > { %v930_v63 = vpop.f32.mrb[4].mxu1 }
 0x33c   : > { %v1899_v0 = vpop.f32.mrb[5].mxu1  ;;  %v937_v1 = vsel %vm761_vm7, %v930_v63, -inf }
 0x33d   : > { %938 = vmax.xlane.f32.xlu0 %v937_v1  ;;  %v933_v3 = vpop.f32.mrb[6].mxu1 }
 0x33e   : > { %v1900_v4 = vpop.f32.mrb[7].mxu1  ;;  %v940_v15 = vsel %vm812_vm8, %v933_v3, -inf }
 0x343   : > { %v2492_v6 = vpop.f32.mrb[8].mxu1 }
 0x344   : > { %v1911_v8 = vpop.f32.mrb[9].mxu1  ;;  %v1060_v17 = vsel %vm761_vm7, %v2492_v6, -inf }
 0x345   : > { %v1056_v9 = vpop.f32.mrb[10].mxu1 }
 0x346   : > { %956 = vrot.lane.b32.xlu1 %v829_v7, %s2230_s20  ;;  %v1912_v10 = vpop.f32.mrb[11].mxu1  ;;  %v1063_v16 = vsel %vm812_vm8, %v1056_v9, -inf }
 0x34b   : > { %v2494_v11 = vpop.f32.mrb[12].mxu1 }
 0x34c   : > { %v1923_v12 = vpop.f32.mrb[13].mxu1  ;;  %v1183_v19 = vsel %vm761_vm7, %v2494_v11, -inf }
 0x34d   : > { %v1179_v13 = vpop.f32.mrb[14].mxu1 }
 0x34e   : > { %v1924_v14 = vpop.f32.mrb[15].mxu1  ;;  %v1186_v18 = vsel %vm812_vm8, %v1179_v13, -inf }
 0x353   : > { %831 = vrot.lane.b32.xlu0 %v829_v7, %s2228_s1 }
 0x36a   : > { %941 = vmax.xlane.f32.xlu1 %v940_v15 }
 0x36e   : > { %1064 = vmax.xlane.f32.xlu1 %v1063_v16 }
 0x372   : > { %1061 = vmax.xlane.f32.xlu0 %v1060_v17  ;;  %1187 = vmax.xlane.f32.xlu1 %v1186_v18 }
 0x376   : > { %1184 = vmax.xlane.f32.xlu0 %v1183_v19 }
 0x383   : > { %1079 = vrot.lane.b32.xlu1 %v829_v7, %s2231_s18 }
 0x38c   : > { %1202 = vrot.lane.b32.xlu0 %v829_v7, %s2232_s27 }
 0x3c2   : > { %v811_v20 = vpop.xlane.xlu1 %810 }
 0x3c3   : > { %v816_v21 = vsub.f32 %v802_v57, %v811_v20 }
 0x3c4   : > { %v815_v22 = vpop.xlane.xlu0 %814 }
 0x3c5   : > { %v818_v24 = vmul.f32 1.442695, %v816_v21  ;;  %v817_v29 = vsub.f32 %v805_v60, %v815_v22 }
 0x3c6   : > { %v957_v38 = vpop.permute.xlu1 %956 }
 0x3c7   : > { %v820_v30 = vmul.f32 1.442695, %v817_v29  ;;  %2076 = vpow2.f32 %v818_v24  ;;  %v962_v40 = vsel %vm836_vm9, %v957_v38, 0 }
 0x3c9   : > { %2078 = vpow2.f32 %v820_v30 }
 0x3ca   : > { %v939_v31 = vpop.xlane.xlu0 %938 }
 0x3cb   : > { %v943_v32 = vsub.f32 %v930_v63, %v939_v31 }
 0x3cd   : > { %v945_v33 = vmul.f32 1.442695, %v943_v32 }
 0x3ce   : > { %v832_v34 = vpop.permute.xlu0 %831 }
 0x3cf   : > { %2080 = vpow2.f32 %v945_v33  ;;  %v838_v35 = vsel %vm836_vm9, %v832_v34, 0 }
 0x3d0   : > { %1890 = vmatpush3.bf16.msra.mxu0 %v838_v35  ;;  %v2068_v35 = vld [vmem:[%s2398_s25] sm:$0xff]  }
 0x3d1   : > { %1901 = vmatprep.subr.bf16.mxu0 %v2219_v23  ;;  %v2506_v36 = vpop.eup %2076  ;;  %1932 = vmatpush3.bf16.msra.mxu1 %v2068_v35 }
 0x3d2   : > { %v822_v12 = vsel %vm761_vm7, %v2506_v36, 0.0  ;;  %1933 = vmatprep.subr.bf16.mxu1 %v2219_v23 }
 0x3d3   : > { %v2079_v37 = vpop.eup %2078 }
 0x3d4   : > { %v828_v39 = vpack.c.bf16 %v2079_v37, %v2506_v36 }
 0x3d6   : > { %1892 = vmatmul.mubr.msk.bf16.vlgmr.msra.gmra.mrb[4].mxu0 %vm761_vm7, %v828_v39 }
 0x3d7   : > { %1902 = vmatpush3.bf16.msra.mxu0 %v962_v40  ;;  %1903 = vmatprep.mubr.msk.bf16.mxu0 %vm2220_vm5, %v2219_v23 }
 0x3d8   : > { %1913 = vmatprep.subr.bf16.mxu0 %v2219_v23 }
 0x3d9   : > { %v2081_v41 = vpop.eup %2080 }
 0x3da   : > { %v949_v42 = vsel %vm761_vm7, %v2081_v41, 0.0 }
 0x3db   : > { %950 = vadd.xlane.f32.xlu1 %v949_v42 }
 0x3f7   : > { %v942_v43 = vpop.xlane.xlu1 %941 }
 0x3f8   : > { %v944_v44 = vsub.f32 %v933_v3, %v942_v43 }
 0x3fa   : > { %v947_v45 = vmul.f32 1.442695, %v944_v44 }
 0x3fb   : > { %v1065_v46 = vpop.xlane.xlu1 %1064 }
 0x3fc   : > { %2082 = vpow2.f32 %v947_v45  ;;  %v1067_v47 = vsub.f32 %v1056_v9, %v1065_v46  ;;  %v2069_v46 = vld [vmem:[%s2398_s25 + $0x8] sm:$0xff]  }
 0x3fd   : > { %1934 = vmatpush3.bf16.msra.mxu1 %v2069_v46 }
 0x3fe   : > { %v1070_v48 = vmul.f32 1.442695, %v1067_v47  ;;  %1947 = vmatprep.subr.bf16.mxu1 %v2219_v23 }
 0x3ff   : > { %v1062_v49 = vpop.xlane.xlu0 %1061  ;;  %v1188_v50 = vpop.xlane.xlu1 %1187 }
 0x400   : > { %2084 = vpow2.f32 %v1070_v48  ;;  %v1066_v51 = vsub.f32 %v2492_v6, %v1062_v49  ;;  %v1190_v52 = vsub.f32 %v1179_v13, %v1188_v50 }
 0x402   : > { %v1068_v53 = vmul.f32 1.442695, %v1066_v51  ;;  %v1193_v54 = vmul.f32 1.442695, %v1190_v52 }
 0x403   : > { %v1185_v55 = vpop.xlane.xlu0 %1184  ;;  %v1080_v59 = vpop.permute.xlu1 %1079 }
 0x404   : > { %2086 = vpow2.f32 %v1068_v53  ;;  %v1189_v56 = vsub.f32 %v2494_v11, %v1185_v55  ;;  %v1085_v62 = vsel %vm836_vm9, %v1080_v59, 0  ;;  %v825_v11 = vsel %vm812_vm8, %v2079_v37, 0.0 }
 0x405   : > { %2088 = vpow2.f32 %v1193_v54 }
 0x406   : > { %v2083_v57 = vpop.eup %2082  ;;  %v1191_v58 = vmul.f32 1.442695, %v1189_v56 }
 0x407   : > { %v952_v60 = vsel %vm812_vm8, %v2083_v57, 0.0  ;;  %v955_v61 = vpack.c.bf16 %v2083_v57, %v2081_v41  ;;  %v1203_v2 = vpop.permute.xlu0 %1202 }
 0x408   : > { %2090 = vpow2.f32 %v1191_v58  ;;  %953 = vadd.xlane.f32.xlu0 %v952_v60  ;;  %v1208_v7 = vsel %vm836_vm9, %v1203_v2, 0 }
 0x409   : > { %1904 = vmatmul.mubr.msk.bf16.vlgmr.msra.gmra.mrb[8].mxu0 %vm761_vm7, %v955_v61 }
 0x40a   : > { %v2085_v63 = vpop.eup %2084  ;;  %1914 = vmatpush3.bf16.msra.mxu0 %v1085_v62  ;;  %1915 = vmatprep.mubr.msk.bf16.mxu0 %vm2220_vm5, %v2219_v23 }
 0x40b   : > { %v1075_v0 = vsel %vm812_vm8, %v2085_v63, 0.0  ;;  %1925 = vmatprep.subr.bf16.mxu0 %v2219_v23 }
 0x40c   : > { %1076 = vadd.xlane.f32.xlu1 %v1075_v0 }
 0x40e   : > { %v2087_v1 = vpop.eup %2086 }
 0x40f   : > { %v2089_v3 = vpop.eup %2088  ;;  %v1072_v4 = vsel %vm761_vm7, %v2087_v1, 0.0  ;;  %v1078_v5 = vpack.c.bf16 %v2085_v63, %v2087_v1 }
 0x410   : > { %1073 = vadd.xlane.f32.xlu0 %v1072_v4  ;;  %v1198_v6 = vsel %vm812_vm8, %v2089_v3, 0.0 }
 0x411   : > { %1199 = vadd.xlane.f32.xlu1 %v1198_v6  ;;  %1916 = vmatmul.mubr.msk.bf16.vlgmr.msra.gmra.mrb[12].mxu0 %vm761_vm7, %v1078_v5 }
 0x412   : > { %v2091_v8 = vpop.eup %2090  ;;  %1926 = vmatpush3.bf16.msra.mxu0 %v1208_v7  ;;  %1927 = vmatprep.mubr.msk.bf16.mxu0 %vm2220_vm5, %v2219_v23 }
 0x413   : > { %v1195_v9 = vsel %vm761_vm7, %v2091_v8, 0.0  ;;  %v1201_v10 = vpack.c.bf16 %v2089_v3, %v2091_v8  ;;  %1939 = vmatprep.subr.bf16.mxu0 %v2219_v23 }
 0x414   : > { %1196 = vadd.xlane.f32.xlu0 %v1195_v9 }
 0x415   : > { %826 = vadd.xlane.f32.xlu1 %v825_v11 }
 0x418   : > { %823 = vadd.xlane.f32.xlu0 %v822_v12 }
 0x419   : > { %1928 = vmatmul.mubr.msk.bf16.vlgmr.msra.gmra.mrb[16].mxu0 %vm761_vm7, %v1201_v10 }
 0x41a   : > { %1943 = vmatprep.mubr.msk.bf16.mxu0 %vm2220_vm5, %v2219_v23 }
 0x468   : > { %v951_v17 = vpop.xlane.xlu1 %950 }
 0x469   : > { %2092 = vrcp.f32 %v951_v17 }
 0x473   : > { %v2093_v22 = vpop.eup %2092 }
 0x495   : > { %v954_v18 = vpop.xlane.xlu0 %953 }
 0x496   : > { %2094 = vrcp.f32 %v954_v18 }
 0x499   : > { %v1077_v19 = vpop.xlane.xlu1 %1076 }
 0x49a   : > { %2096 = vrcp.f32 %v1077_v19 }
 0x49d   : > { %v1074_v20 = vpop.xlane.xlu0 %1073 }
 0x49e   : > { %2098 = vrcp.f32 %v1074_v20  ;;  %v1200_v34 = vpop.xlane.xlu1 %1199 }
 0x49f   : > { %2100 = vrcp.f32 %v1200_v34 }
 0x4a0   : > { %v2095_v29 = vpop.eup %2094 }
 0x4a1   : > { %v1197_v36 = vpop.xlane.xlu0 %1196 }
 0x4a2   : > { %2102 = vrcp.f32 %v1197_v36  ;;  %v827_v57 = vpop.xlane.xlu1 %826 }
 0x4a3   : > { %2104 = vrcp.f32 %v827_v57 }
 0x4a4   : > { %v2097_v39 = vpop.eup %2096 }
 0x4a5   : > { %v824_v58 = vpop.xlane.xlu0 %823 }
 0x4a6   : > { %2106 = vrcp.f32 %v824_v58 }
 0x4a8   : > { %v2099_v41 = vpop.eup %2098 }
 0x4a9   : > { %v2538_v13 = vpop.f32.mrb[4].mxu0  ;;  %v2101_v49 = vpop.eup %2100 }
 0x4aa   : > { %v1893_v14 = vpop.f32.mrb[5].mxu0 }
 0x4ab   : > { %v2540_v15 = vpop.f32.mrb[6].mxu0 }
 0x4ac   : > { %v1894_v16 = vpop.f32.mrb[7].mxu0  ;;  %v2103_v51 = vpop.eup %2102 }
 0x4ad   : > { %v2105_v60 = vpop.eup %2104 }
 0x4ae   : > { %v884_v4 = vmul.f32 %v2105_v60, %v2540_v15 }
 0x4b0   : > { %v2107_v62 = vpop.eup %2106 }
 0x4b1   : > { %v883_v3 = vmul.f32 %v2107_v62, %v2538_v13  ;;  %v1294_v13 = vsub.s32 3, %v2443_v27  ;;  %v2073_v62 = vld [vmem:[%s2408_s19 + $0x8] sm:$0xff]  }
 0x4b3   : > { %v1295_v15 = vrot.slane %v2447_v28, %v1294_v13 }
 0x4dc   : > { %v998_v21 = vpop.f32.mrb[8].mxu0 }
 0x4dd   : > { %v1905_v24 = vpop.f32.mrb[9].mxu0  ;;  %v1007_v31 = vmul.f32 %v2093_v22, %v998_v21 }
 0x4de   : > { %v1001_v30 = vpop.f32.mrb[10].mxu0 }
 0x4df   : > { %v1008_v32 = vmul.f32 %v2095_v29, %v1001_v30  ;;  %v1906_v33 = vpop.f32.mrb[11].mxu0 }
 0x4e1   : > { %v2051_v37 = vpack.i.bf16 %v1008_v32, %v1007_v31 }
 0x4e3   : > { %2052 = vrot.lane.b32.xlu0 %v2051_v37, %s2233_s23 }
 0x4e4   : > { %v1121_v38 = vpop.f32.mrb[12].mxu0 }
 0x4e5   : > { %v1917_v40 = vpop.f32.mrb[13].mxu0  ;;  %v1130_v43 = vmul.f32 %v2099_v41, %v1121_v38  ;;  %v2071_v41 = vld [vmem:[%s2403_s13 + $0x8] sm:$0xff]  }
 0x4e6   : > { %v1124_v42 = vpop.f32.mrb[14].mxu0 }
 0x4e7   : > { %v1131_v44 = vmul.f32 %v2097_v39, %v1124_v42  ;;  %v1918_v45 = vpop.f32.mrb[15].mxu0 }
 0x4e9   : > { %v2056_v47 = vpack.i.bf16 %v1131_v44, %v1130_v43 }
 0x4eb   : > { %2057 = vrot.lane.b32.xlu1 %v2056_v47, %s2234_s12 }
 0x4ec   : > { %v1244_v48 = vpop.f32.mrb[16].mxu0 }
 0x4ed   : > { %v1929_v50 = vpop.f32.mrb[17].mxu0  ;;  %v1253_v53 = vmul.f32 %v2103_v51, %v1244_v48  ;;  %v1384_v48 = vsub.s32 4, %v2443_v27 }
 0x4ee   : > { %v1247_v52 = vpop.f32.mrb[18].mxu0 }
 0x4ef   : > { %v1254_v54 = vmul.f32 %v2101_v49, %v1247_v52  ;;  %v1930_v55 = vpop.f32.mrb[19].mxu0  ;;  %v1385_v50 = vrot.slane %v2447_v28, %v1384_v48  ;;  %v1390_v52 = vsub.s32 5, %v2443_v27 }
 0x4f1   : > { %v2061_v56 = vpack.i.bf16 %v1254_v54, %v1253_v53 }
 0x4f3   : > { %2062 = vrot.lane.b32.xlu1 %v2061_v56, %s2235_s26  ;;  %v1391_v56 = vrot.slane %v2447_v28, %v1390_v52 }
 0x555   : > { %v2053_v59 = vpop.permute.xlu0 %2052 }
 0x556   : > { %v2055_v63 = vunpack.i.h.bf16 %v2053_v59  ;;  %v2054_v0 = vunpack.i.l.bf16 %v2053_v59 }
 0x558   : > { %v1280_v6 = vsel %vm761_vm7, %v884_v4, %v2055_v63  ;;  %v1279_v7 = vsel %vm761_vm7, %v883_v3, %v2054_v0  ;;  %v2074_v63 = vld [vmem:[%s2408_s19 + $0x10] sm:$0xff]   ;;  %v2075_v0 = vld [vmem:[%s2408_s19 + $0x18] sm:$0xff]  }
 0x55d   : > { %v2058_v61 = vpop.permute.xlu1 %2057 }
 0x55e   : > { %v2060_v1 = vunpack.i.h.bf16 %v2058_v61  ;;  %v2059_v2 = vunpack.i.l.bf16 %v2058_v61  ;;  %v2072_v61 = vld [vmem:[%s2408_s19] sm:$0xff]  }
 0x560   : > { %v1283_v10 = vsel %vm1281_vm10, %v1280_v6, %v2060_v1  ;;  %v1282_v11 = vsel %vm1281_vm10, %v1279_v7, %v2059_v2  ;;  %v1815_v1 = vld [vmem:[%s557_s22] ss:$0 sm:$0xff] }
 0x565   : > { %v2063_v5 = vpop.permute.xlu1 %2062 }
 0x566   : > { %v2065_v8 = vunpack.i.h.bf16 %v2063_v5  ;;  %v2064_v9 = vunpack.i.l.bf16 %v2063_v5 }
 0x568   : > { %v1286_v12 = vsel %vm1284_vm11, %v1283_v10, %v2065_v8  ;;  %v1285_v14 = vsel %vm1284_vm11, %v1282_v11, %v2064_v9 }
 0x569   : > { %v1291_v16 = vpack.c.bf16 %v1286_v12, %v1285_v14 }
 0x56b   : > { %1936 = vmatmul.mubr.msk.bf16.vlgmr.msra.gmra.mrb[16].mxu1 %vm687_vm6, %v1291_v16 }
 0x56c   : > { %1955 = vmatprep.mubr.msk.bf16.mxu1 %vm2220_vm5, %v2219_v23  ;;  %1948 = vmatpush3.bf16.msra.mxu1 %v2072_v61 }
 0x56d   : > { %1949 = vmatprep.subr.bf16.mxu1 %v2219_v23 }
 0x570   : > { %1950 = vmatpush3.bf16.msra.mxu1 %v2073_v62  ;;  %v1824_v62 = vld [vmem:[%s2413_s21 + $0x8] ss:$0 sm:$0xff] }
 0x571   : > { %1951 = vmatprep.subr.bf16.mxu1 %v2219_v23 }
 0x574   : > { %1952 = vmatpush3.bf16.msra.mxu1 %v2074_v63 }
 0x575   : > { %1953 = vmatprep.subr.bf16.mxu1 %v2219_v23 }
 0x578   : > { %1954 = vmatpush3.bf16.msra.mxu1 %v2075_v0 }
 0x63e   : > { %v1345_v17 = vpop.f32.mrb[16].mxu1 }
 0x63f   : > { %v1346_v18 = vadd.f32 %v1345_v17, %v1295_v15  ;;  %v1937_v19 = vpop.f32.mrb[17].mxu1 }
 0x640   : > { %v1348_v20 = vpop.f32.mrb[18].mxu1 }
 0x641   : > { %v1349_v21 = vadd.f32 %v1348_v20, %v1295_v15  ;;  %v1938_v22 = vpop.f32.mrb[19].mxu1  ;;  %v1352_v24 = vadd.f32 %v1346_v18, %v2439_v25 }
 0x643   : > { %v1354_v29 = vsel %vm687_vm6, %v1352_v24, 0.0  ;;  %v1353_v30 = vadd.f32 %v1349_v21, %v2441_v26  ;;  %v2070_v26 = vld [vmem:[%s2403_s13] sm:$0xff]  }
 0x644   : > { %1355 = vadd.xlane.f32.xlu0 %v1354_v29  ;;  %1940 = vmatpush3.bf16.msra.mxu0 %v2070_v26 }
 0x645   : > { %v1358_v31 = vsel %vm1357_vm12, %v1353_v30, 0.0  ;;  %1941 = vmatprep.subr.bf16.mxu0 %v2219_v23 }
 0x646   : > { %1359 = vadd.xlane.f32.xlu1 %v1358_v31  ;;  %v1491_v31 = vsub.s32 6, %v2443_v27 }
 0x648   : > { %1942 = vmatpush3.bf16.msra.mxu0 %v2071_v41 }
 0x6d1   : > { %v1356_v32 = vpop.xlane.xlu0 %1355 }
 0x6d2   : > { %v1362_v33 = vmul.f32 0.03125, %v1356_v32  ;;  %v1492_v32 = vrot.slane %v2447_v28, %v1491_v31 }
 0x6d3   : > { %v1360_v34 = vpop.xlane.xlu1 %1359 }
 0x6d4   : > { %v1364_v35 = vsub.f32 %v1352_v24, %v1362_v33  ;;  %v1363_v36 = vmul.f32 0.03125, %v1360_v34 }
 0x6d6   : > { %v1365_v37 = vsub.f32 %v1353_v30, %v1363_v36  ;;  %v1366_v38 = vmul.f32 %v1364_v35, %v1364_v35 }
 0x6d8   : > { %v1368_v25 = vsel %vm687_vm6, %v1366_v38, 0.0  ;;  %v1367_v39 = vmul.f32 %v1365_v37, %v1365_v37 }
 0x6d9   : > { %1369 = vadd.xlane.f32.xlu0 %v1368_v25 }
 0x6da   : > { %v1371_v40 = vsel %vm1357_vm12, %v1367_v39, 0.0 }
 0x6dd   : > { %1372 = vadd.xlane.f32.xlu0 %v1371_v40 }
 0x766   : > { %v1370_v42 = vpop.xlane.xlu0 %1369 }
 0x767   : > { %v1374_v43 = vmul.f32 0.03125, %v1370_v42 }
 0x769   : > { %v1376_v44 = vadd.f32 1e-05, %v1374_v43 }
 0x76a   : > { %v1373_v45 = vpop.xlane.xlu0 %1372 }
 0x76b   : > { %2108 = vrsqrt.f32 %v1376_v44  ;;  %v1375_v46 = vmul.f32 0.03125, %v1373_v45 }
 0x76d   : > { %v1377_v47 = vadd.f32 1e-05, %v1375_v46 }
 0x76f   : > { %2110 = vrsqrt.f32 %v1377_v47 }
 0x775   : > { %v2109_v49 = vpop.eup %2108 }
 0x776   : > { %v1380_v51 = vmul.f32 %v2109_v49, %v1364_v35 }
 0x778   : > { %v1386_v54 = vmul.f32 %v1385_v50, %v1380_v51 }
 0x779   : > { %v2111_v53 = vpop.eup %2110 }
 0x77a   : > { %v1381_v55 = vmul.f32 %v2111_v53, %v1365_v37  ;;  %v1392_v58 = vadd.f32 %v1391_v56, %v1386_v54 }
 0x77c   : > { %v1387_v57 = vmul.f32 %v1385_v50, %v1381_v55 }
 0x77e   : > { %v1393_v59 = vadd.f32 %v1391_v56, %v1387_v57  ;;  %v1592_v57 = vsub.s32 7, %v2443_v27 }
 0x780   : > { %v1398_v60 = vpack.c.bf16 %v1393_v59, %v1392_v58 }
 0x782   : > { %1944 = vmatmul.mubr.msk.bf16.vlgmr.msra.gmra.mrb[20].mxu0 %vm687_vm6, %v1398_v60 }
 0x855   : > { %v1455_v2 = vpop.f32.mrb[20].mxu0 }
 0x856   : > { %v1456_v3 = vadd.f32 %v1815_v1, %v1455_v2  ;;  %v1945_v4 = vpop.f32.mrb[21].mxu0 }
 0x857   : > { %v1458_v5 = vpop.f32.mrb[22].mxu0 }
 0x858   : > { %v1462_v6 = vmul.f32 %v1456_v3, %v1456_v3  ;;  %v1459_v7 = vadd.f32 %v1815_v1, %v1458_v5  ;;  %v1946_v8 = vpop.f32.mrb[23].mxu0 }
 0x85a   : > { %v1464_v9 = vmul.f32 %v1462_v6, %v1456_v3  ;;  %v1463_v10 = vmul.f32 %v1459_v7, %v1459_v7 }
 0x85c   : > { %v1466_v11 = vmul.f32 0.044715, %v1464_v9  ;;  %v1465_v12 = vmul.f32 %v1463_v10, %v1459_v7 }
 0x85e   : > { %v1468_v14 = vadd.f32 %v1466_v11, %v1456_v3  ;;  %v1467_v23 = vmul.f32 0.044715, %v1465_v12 }
 0x860   : > { %v1470_v16 = vmul.f32 0.7978846, %v1468_v14  ;;  %v1469_v13 = vadd.f32 %v1467_v23, %v1459_v7 }
 0x862   : > { %2112 = vtanh.f32 %v1470_v16  ;;  %v1471_v15 = vmul.f32 0.7978846, %v1469_v13 }
 0x864   : > { %2114 = vtanh.f32 %v1471_v15 }
 0x86c   : > { %v2113_v17 = vpop.eup %2112 }
 0x86d   : > { %v1474_v18 = vadd.f32 1.0, %v2113_v17 }
 0x86e   : > { %v2115_v19 = vpop.eup %2114 }
 0x86f   : > { %v1476_v20 = vmul.f32 0.5, %v1474_v18  ;;  %v1475_v21 = vadd.f32 1.0, %v2115_v19 }
 0x871   : > { %v1477_v22 = vmul.f32 0.5, %v1475_v21  ;;  %v1478_v24 = vmul.f32 %v1476_v20, %v1456_v3 }
 0x873   : > { %v1479_v29 = vmul.f32 %v1477_v22, %v1459_v7 }
 0x875   : > { %v1488_v30 = vpack.c.bf16 %v1479_v29, %v1478_v24 }
 0x877   : > { %1956 = vmatmul.mubr.msk.bf16.vlgmr.msra.gmra.mrb[20].mxu1 %vm1517_vm13, %v1488_v30 }
 0x94a   : > { %v1555_v33 = vpop.f32.mrb[20].mxu1 }
 0x94b   : > { %v1556_v34 = vadd.f32 %v1555_v33, %v1492_v32  ;;  %v1957_v35 = vpop.f32.mrb[21].mxu1 }
 0x94c   : > { %v1558_v36 = vpop.f32.mrb[22].mxu1 }
 0x94d   : > { %v1559_v37 = vadd.f32 %v1558_v36, %v1492_v32  ;;  %v1958_v38 = vpop.f32.mrb[23].mxu1  ;;  %v1562_v25 = vadd.f32 %v1556_v34, %v1392_v58  ;;  %v1593_v58 = vrot.slane %v2447_v28, %v1592_v57 }
 0x94f   : > { %v1564_v39 = vsel %vm687_vm6, %v1562_v25, 0.0  ;;  %v1563_v40 = vadd.f32 %v1559_v37, %v1393_v59 }
 0x950   : > { %1565 = vadd.xlane.f32.xlu1 %v1564_v39 }
 0x951   : > { %v1567_v26 = vsel %vm1357_vm12, %v1563_v40, 0.0 }
 0x952   : > { %1568 = vadd.xlane.f32.xlu0 %v1567_v26 }
 0x9dd   : > { %v1566_v41 = vpop.xlane.xlu1 %1565 }
 0x9de   : > { %v1570_v42 = vmul.f32 0.03125, %v1566_v41 }
 0x9df   : > { %v1569_v43 = vpop.xlane.xlu0 %1568 }
 0x9e0   : > { %v1572_v44 = vsub.f32 %v1562_v25, %v1570_v42  ;;  %v1571_v45 = vmul.f32 0.03125, %v1569_v43 }
 0x9e2   : > { %v1573_v46 = vsub.f32 %v1563_v40, %v1571_v45  ;;  %v1574_v47 = vmul.f32 %v1572_v44, %v1572_v44 }
 0x9e4   : > { %v1576_v48 = vsel %vm687_vm6, %v1574_v47, 0.0  ;;  %v1575_v49 = vmul.f32 %v1573_v46, %v1573_v46 }
 0x9e5   : > { %1577 = vadd.xlane.f32.xlu1 %v1576_v48 }
 0x9e6   : > { %v1579_v50 = vsel %vm1357_vm12, %v1575_v49, 0.0 }
 0x9e7   : > { %1580 = vadd.xlane.f32.xlu0 %v1579_v50 }
 0xa72   : > { %v1578_v51 = vpop.xlane.xlu1 %1577 }
 0xa73   : > { %v1582_v52 = vmul.f32 0.03125, %v1578_v51 }
 0xa74   : > { %v1581_v53 = vpop.xlane.xlu0 %1580 }
 0xa75   : > { %v1584_v54 = vadd.f32 1e-05, %v1582_v52  ;;  %v1583_v55 = vmul.f32 0.03125, %v1581_v53 }
 0xa77   : > { %2116 = vrsqrt.f32 %v1584_v54  ;;  %v1585_v56 = vadd.f32 1e-05, %v1583_v55 }
 0xa79   : > { %2118 = vrsqrt.f32 %v1585_v56 }
 0xa81   : > { %v2117_v59 = vpop.eup %2116 }
 0xa82   : > { %v1588_v60 = vmul.f32 %v2117_v59, %v1572_v44 }
 0xa83   : > { %v2119_v61 = vpop.eup %2118 }
 0xa84   : > { %v1594_v63 = vmul.f32 %v1593_v58, %v1588_v60  ;;  %v1589_v0 = vmul.f32 %v2119_v61, %v1573_v46  ;;  %1607 = sbr.rel (%p1825_p1) target bundleno = 2701 (0xa8d), region = 76 }
 0xa86   : > { %v1600_v1 = vadd.f32 %v1824_v62, %v1594_v63  ;;  %v1595_v2 = vmul.f32 %v1593_v58, %v1589_v0 }
 0xa88   : > { %1602 = vst.msk [vmem:[#allocation2] sm:$0xff] %vm687_vm6, %v1600_v1  ;;  %v1601_v3 = vadd.f32 %v1824_v62, %v1595_v2 }
 0xa8a   : > { %1603 = vst.msk [vmem:[#allocation2 + $0x8] sm:$0xf] %vm1357_vm12, %v1601_v3  ;;  %v1608_v4 = vpack.c.bf16 (!%p1825_p1), %v1601_v3, %v1601_v3 }
 0xa8c   : > { %1610 = vst.msk [vmem:[%s519_s15] sm:$0x3] %vm1609_vm14, %v1608_v4 }
 0xa8d PF: > { %s2698_s14 = sld [smem:[#allocation9_spill]]  ;;  %s2701_s3 = sld [smem:[#allocation21_spill]] }
 0xa8e   : > { %s2699_s19 = sld [smem:[#allocation7_spill]]  ;;  %s1625_s0 = sshll.u32 %s519_s15, 4  ;;  %s1626_s0 = int_to_ptr.vmem [resolvable:$true] %s1625_s0 }
 0xa8f   : > { %s2120_s16 = scalar_lea.vmem %s1626_s0, 32  ;;  %s2236_s20 = smov [#allocation3]  }
 0xa90   : > { %p2121_p2 = scmp.ne.s32.totalorder %s1626_s0, %s2120_s16  ;;  %s2124_s18 = sshll.u32 %s2236_s20, 4  ;;  %s2125_s18 = int_to_ptr.vmem [resolvable:$false] %s2124_s18 }
 0xa91   : > { %s2126_s27 = scalar_lea.vmem %s2125_s18, 64  ;;  %p2127_p6 = scmp.lt.s32.totalorder %s1626_s0, %s2125_s18 }
 0xa92   : > { %p2122_p4 = pnand %p2121_p2, %p2351_p3  ;;  %p2128_p7 = scmp.lt.s32.totalorder %s2126_s27, %s2120_s16 }
 0xa93   : > { %s1827_s22 = sshll.u32 %s2698_s14, 5 }
 0xa94   : > { %s2599_s30 = scalar_lea.hbm %s2701_s3, %s1827_s22  ;;  %s2702_s24 = sand.u32 1, %s2699_s19  }
 0xa95   : > { %s1612_s1 = scalar_lea.sflag [#allocation4], %s2702_s24  ;;  %p2123_p5 = pneg %p2122_p4 }
 0xa96   : > { %p2129_p8 = por %p2128_p7, %p2127_p6 }
 0xa98   : > { %p2130_p10 = pnand %p2129_p8, %p2123_p5 }
 0xa9a   : > { %2133 = shalt.err (!%p2130_p10)
}
 0xa9b   : > { %s2134_s29 = scalar_lea.hbm %s2599_s30, 32  ;;  %s2138_s12 = scalar_lea.hbm %s2701_s3, 64 }
 0xa9c   : > { %p2135_p11 = scmp.ne.s32.totalorder %s2599_s30, %s2134_s29  ;;  %p2139_p0 = scmp.lt.u32.totalorder %s2599_s30, %s2701_s3 }
 0xa9d   : > { %p2140_p1 = scmp.lt.u32.totalorder %s2138_s12, %s2134_s29  ;;  %p2142_p4 = scmp.lt.u32.totalorder %s2134_s29, %s2599_s30 }
 0xa9e   : > { %p2136_p12 = pnand %p2135_p11, %p2351_p3 }
 0xa9f   : > { %p2141_p2 = por %p2140_p1, %p2139_p0 }
 0xaa0   : > { %p2137_p13 = pneg %p2136_p12 }
 0xaa1   : > { %p2143_p5 = por %p2142_p4, %p2141_p2 }
 0xaa3   : > { %p2144_p6 = pnand %p2143_p5, %p2137_p13 }
 0xaa5   : > { %2147 = shalt.err (!%p2144_p6)
}
 0xaa6   : > { %1959 = dma.vmem_to_hbm [thread:$0]  (%p2351_p3), %s1626_s0, 32, %s2599_s30, %s1612_s1  }
 0xaa7 PF: > { %s2703_s13 = sld [smem:[#allocation12_spill]]  ;;  %s2704_s14 = sld [smem:[#allocation6_spill]] }
 0xaad   : > { %p1965_p7 = scmp.ge.s32.totalorder %s2703_s13, 2  ;;  %s1637_s22 = sand.u32 1, %s2704_s14  }
 0xaae   : > { %s1638_s17 = scalar_lea.sflag [#allocation4], %s1637_s22 }
 0xaaf   : > { %p1962_p8 = pnand %p1965_p7, %p2361_p9 }
 0xab1   : > { %2181 = dma.done.wait (!%p1962_p8), %s1638_s17, 32  }
 0xab2   : > { %2183 = vsyncadd (!%p1962_p8), %s1638_s17, 4294967264  ;;  %s25_s28 = sadd.s32 1, %s2703_s13   ;;  %s2706_s21 = sld [smem:[#allocation7_spill]] }
 0xab3   : > { %p22_p10 = scmp.ge.s32.totalorder %s25_s28, 6   ;;  %s2707_s22 = sld [smem:[#allocation8_spill]] }
 0xab4   : > { %s2708_s23 = sld [smem:[#allocation17_spill]]  ;;  %s2709_s24 = sld [smem:[#allocation10_spill]] }
 0xab5   : > { %s2710_s25 = sld [smem:[#allocation11_spill]]  ;;  %s2711_s26 = sld [smem:[#allocation13_spill]] }
 0xab6   : > { %s2712_s27 = sld [smem:[#allocation15_spill]]  ;;  %24 = sbr.rel (!%p22_p10) target bundleno = 10 (0xa), region = 132 }
 0xabd   :  { %1643 = vsyncpa [#allocation4], 1 }
 0xabe   :  { %1645 = vsyncpa [#allocation4 + $0x1], 1 }

</bundles_post_ra>
